<compile_context>
chip_gen: v5e
topology: v5e:2x2
jax: 0.10.0
libtpu: 0.0.40
codegen_flags: <defaults>
</compile_context>

<pallas_src>
import math

import jax
import jax.numpy as jnp
from jax import lax
from jax.experimental import pallas as pl
from jax.experimental.pallas import tpu as pltpu

# Module hyper-parameters (consistent with Linear(768*FFT_OUT, HIDDEN) -> ... -> FINAL).
FFT_OUT = 1
IN_DIM = 768 * FFT_OUT       # 768
HIDDEN_SIZE = 256
FINAL_VECTOR_SIZE = 128
BATCH = 8                    # per-input batch for the demo run

_INV_SQRT2 = 0.7071067811865476  # 1/sqrt(2), precomputed (no per-element divide)
_MAX_TILE = 256                  # per-input rows per grid step (M = 2*tile on the MXU)


def _gelu_exact(x):
    # nn.GELU() default: exact erf-based GELU. erf runs on the VPU/EUP; multiply-by-constant
    # replaces the divide.
    return 0.5 * x * (1.0 + lax.erf(x * jnp.asarray(_INV_SQRT2, x.dtype)))


def _mlp_kernel(x1_ref, x2_ref, w1_ref, b1_ref, w2_ref, b2_ref, w3_ref, b3_ref,
                o1_ref, o2_ref):
    # TODO(synk): Dropout(0.1) is identity in eval/inference mode; training parity would
    # need pltpu.prng_seed/prng_random_bits masking.
    tb = x1_ref.shape[0]
    # Stack the two siamese tiles in VMEM (free vs. an HBM concat); one MXU pass with
    # M = 2*tb rows. bf16 operands into the MXU, f32 accumulation, f32 bias-add + GELU.
    x = jnp.concatenate([x1_ref[...], x2_ref[...]], axis=0).astype(jnp.bfloat16)
    h = jnp.dot(x, w1_ref[...], preferred_element_type=jnp.float32)
    h = _gelu_exact(h + b1_ref[...])
    h = jnp.dot(h.astype(jnp.bfloat16), w2_ref[...],
                preferred_element_type=jnp.float32)
    h = _gelu_exact(h + b2_ref[...])
    out = jnp.dot(h.astype(jnp.bfloat16), w3_ref[...],
                  preferred_element_type=jnp.float32)
    out = out + b3_ref[...]
    o1_ref[...] = out[:tb].astype(o1_ref.dtype)
    o2_ref[...] = out[tb:].astype(o2_ref.dtype)


def _choose_tile(batch, cap=_MAX_TILE):
    """Pad batch to a sublane multiple and pick a per-input tile that divides it."""
    bp = -(-batch // 8) * 8                      # next multiple of 8
    if bp <= cap:
        return bp, bp                            # single grid step
    for t in range(cap, 7, -8):                  # largest multiple of 8 <= cap dividing bp
        if bp % t == 0:
            return bp, t
    return bp, 8


def _mlp_fused(x1, x2, params, *, tb):
    """Run the siamese MLP: x1, x2 of shape (B, IN_DIM) -> two (B, FINAL) outputs."""
    w1, b1, w2, b2, w3, b3 = params
    B = x1.shape[0]
    assert tb % 8 == 0 and B % tb == 0

    resident = lambda shape: pl.BlockSpec(shape, lambda i: (0, 0))  # weights stay resident

    rows = 2 * B
    mm_flops_per_row = 2 * (IN_DIM * HIDDEN_SIZE
                            + HIDDEN_SIZE * HIDDEN_SIZE
                            + HIDDEN_SIZE * FINAL_VECTOR_SIZE)
    weight_bytes = (w1.size * w1.dtype.itemsize + w2.size * w2.dtype.itemsize
                    + w3.size * w3.dtype.itemsize)
    bias_bytes = (b1.size + b2.size + b3.size) * 4
    io_bytes = (rows * IN_DIM * x1.dtype.itemsize
                + rows * FINAL_VECTOR_SIZE * 4)
    cost = pl.CostEstimate(
        flops=rows * mm_flops_per_row,
        transcendentals=rows * 2 * HIDDEN_SIZE,                     # erf count
        bytes_accessed=weight_bytes + bias_bytes + io_bytes,
    )

    return pl.pallas_call(
        _mlp_kernel,
        out_shape=(jax.ShapeDtypeStruct((B, FINAL_VECTOR_SIZE), jnp.float32),
                   jax.ShapeDtypeStruct((B, FINAL_VECTOR_SIZE), jnp.float32)),
        grid_spec=pltpu.PrefetchScalarGridSpec(
            num_scalar_prefetch=0,
            grid=(B // tb,),
            in_specs=[
                pl.BlockSpec((tb, IN_DIM), lambda i: (i, 0)),        # x1 tile
                pl.BlockSpec((tb, IN_DIM), lambda i: (i, 0)),        # x2 tile
                resident((IN_DIM, HIDDEN_SIZE)),
                resident((1, HIDDEN_SIZE)),
                resident((HIDDEN_SIZE, HIDDEN_SIZE)),
                resident((1, HIDDEN_SIZE)),
                resident((HIDDEN_SIZE, FINAL_VECTOR_SIZE)),
                resident((1, FINAL_VECTOR_SIZE)),
            ],
            out_specs=[
                pl.BlockSpec((tb, FINAL_VECTOR_SIZE), lambda i: (i, 0)),
                pl.BlockSpec((tb, FINAL_VECTOR_SIZE), lambda i: (i, 0)),
            ],
        ),
        compiler_params=pltpu.CompilerParams(
            dimension_semantics=("parallel",)),
        cost_estimate=cost,
    )(x1, x2, w1, b1, w2, b2, w3, b3)


def verifier_forward(x1, x2, params):
    """Siamese forward: one fused pallas_call, no host-side concat/slice when aligned."""
    B = x1.shape[0]
    Bp, tb = _choose_tile(B)
    if Bp != B:  # pad only when misaligned (rare); padded rows are sliced back off
        pad = Bp - B
        x1 = jnp.pad(x1, ((0, pad), (0, 0)))
        x2 = jnp.pad(x2, ((0, pad), (0, 0)))
    o1, o2 = _mlp_fused(x1, x2, params, tb=tb)
    if Bp != B:
        o1, o2 = o1[:B], o2[:B]
    return o1, o2


def _xavier_uniform(key, fan_in, fan_out, gain=0.001, dtype=jnp.float32):
    # Matches torch.nn.init.xavier_uniform_(w, gain); stored as (fan_in, fan_out)
    # (transposed relative to PyTorch layout).
    limit = gain * math.sqrt(6.0 / (fan_in + fan_out))
    return jax.random.uniform(key, (fan_in, fan_out), dtype,
                              minval=-limit, maxval=limit)


def init_params(key):
    # Weights in bf16 (halves weight DMA, native bf16 MXU path); biases kept in f32.
    # TODO(synk): optional fp8 weight path on v7x (needs per-tensor scale) not implemented.
    k1, k2, k3 = jax.random.split(key, 3)
    w1 = _xavier_uniform(k1, IN_DIM, HIDDEN_SIZE).astype(jnp.bfloat16)
    b1 = jnp.full((1, HIDDEN_SIZE), 0.001, jnp.float32)
    w2 = _xavier_uniform(k2, HIDDEN_SIZE, HIDDEN_SIZE).astype(jnp.bfloat16)
    b2 = jnp.full((1, HIDDEN_SIZE), 0.001, jnp.float32)
    w3 = _xavier_uniform(k3, HIDDEN_SIZE, FINAL_VECTOR_SIZE).astype(jnp.bfloat16)
    b3 = jnp.full((1, FINAL_VECTOR_SIZE), 0.001, jnp.float32)
    return (w1, b1, w2, b2, w3, b3)


if __name__ == "__main__":
    key = jax.random.PRNGKey(0)
    kp, kx1, kx2 = jax.random.split(key, 3)

    params = init_params(kp)
    x1 = jax.random.normal(kx1, (BATCH, IN_DIM), jnp.float32)
    x2 = jax.random.normal(kx2, (BATCH, IN_DIM), jnp.float32)

    fwd = jax.jit(verifier_forward)
    out1, out2 = fwd(x1, x2, params)
    jax.block_until_ready((out1, out2))

    # Pure-JAX reference mirroring the kernel's dtype path (bf16 operands, f32 accumulate).
    def ref_once(x, p):
        w1, b1, w2, b2, w3, b3 = p
        f32 = lambda a: a.astype(jnp.float32)
        bf = lambda a: a.astype(jnp.bfloat16).astype(jnp.float32)
        h = jax.nn.gelu(bf(x) @ f32(w1) + b1, approximate=False)
        h = jax.nn.gelu(bf(h) @ f32(w2) + b2, approximate=False)
        return bf(h) @ f32(w3) + b3

    r1, r2 = ref_once(x1, params), ref_once(x2, params)
    assert out1.shape == (BATCH, FINAL_VECTOR_SIZE)
    assert out2.shape == (BATCH, FINAL_VECTOR_SIZE)
    assert out1.dtype == jnp.float32 and out2.dtype == jnp.float32
    assert jnp.allclose(out1, r1, atol=1e-5, rtol=1e-3)
    assert jnp.allclose(out2, r2, atol=1e-5, rtol=1e-3)

    # Robustness check: batch not a multiple of 8 (exercises the padding path).
    y1 = jax.random.normal(kx1, (5, IN_DIM), jnp.float32)
    y2 = jax.random.normal(kx2, (5, IN_DIM), jnp.float32)
    p1, p2 = jax.jit(verifier_forward)(y1, y2, params)
    jax.block_until_ready((p1, p2))
    assert p1.shape == (5, FINAL_VECTOR_SIZE) and p2.shape == (5, FINAL_VECTOR_SIZE)
    assert jnp.allclose(p1, ref_once(y1, params), atol=1e-5, rtol=1e-3)
    assert jnp.allclose(p2, ref_once(y2, params), atol=1e-5, rtol=1e-3)

    print("KERNEL_OK")
</pallas_src>

<mosaic_0001>
module attributes {stable_mosaic.version = 11 : i64} {
  func.func @_mlp_kernel(%arg0: i32, %arg1: memref<8x768xf32, #tpu.memory_space<vmem>>, %arg2: memref<8x768xf32, #tpu.memory_space<vmem>>, %arg3: memref<768x256xbf16, #tpu.memory_space<vmem>>, %arg4: memref<1x256xf32, #tpu.memory_space<vmem>>, %arg5: memref<256x256xbf16, #tpu.memory_space<vmem>>, %arg6: memref<1x256xf32, #tpu.memory_space<vmem>>, %arg7: memref<256x128xbf16, #tpu.memory_space<vmem>>, %arg8: memref<1x128xf32, #tpu.memory_space<vmem>>, %arg9: memref<8x128xf32, #tpu.memory_space<vmem>>, %arg10: memref<8x128xf32, #tpu.memory_space<vmem>>) attributes {dimension_semantics = [#tpu.dimension_semantics<parallel>], iteration_bounds = array<i64: 1>, scalar_prefetch = 0 : i64, scratch_operands = 0 : i64, tpu.core_type = #tpu.core_type<tc>, window_params = [{transform_indices = @transform_0, window_bounds = array<i64: 8, 768>}, {transform_indices = @transform_1, window_bounds = array<i64: 8, 768>}, {pipeline_mode = #tpu.pipeline_mode<synchronous>, transform_indices = @transform_2, window_bounds = array<i64: 768, 256>}, {pipeline_mode = #tpu.pipeline_mode<synchronous>, transform_indices = @transform_3, window_bounds = array<i64: 1, 256>}, {pipeline_mode = #tpu.pipeline_mode<synchronous>, transform_indices = @transform_4, window_bounds = array<i64: 256, 256>}, {pipeline_mode = #tpu.pipeline_mode<synchronous>, transform_indices = @transform_5, window_bounds = array<i64: 1, 256>}, {pipeline_mode = #tpu.pipeline_mode<synchronous>, transform_indices = @transform_6, window_bounds = array<i64: 256, 128>}, {pipeline_mode = #tpu.pipeline_mode<synchronous>, transform_indices = @transform_7, window_bounds = array<i64: 1, 128>}, {transform_indices = @transform_8, window_bounds = array<i64: 8, 128>}, {transform_indices = @transform_9, window_bounds = array<i64: 8, 128>}]} {
    %c0 = arith.constant 0 : index
    %c0_0 = arith.constant 0 : index
    %0 = vector.load %arg1[%c0, %c0_0] : memref<8x768xf32, #tpu.memory_space<vmem>>, vector<8x768xf32>
    %c0_1 = arith.constant 0 : index
    %c0_2 = arith.constant 0 : index
    %1 = vector.load %arg2[%c0_1, %c0_2] : memref<8x768xf32, #tpu.memory_space<vmem>>, vector<8x768xf32>
    %2 = tpu.concatenate %0, %1 in 0 : vector<8x768xf32>, vector<8x768xf32> -> vector<16x768xf32>
    %3 = arith.truncf %2 : vector<16x768xf32> to vector<16x768xbf16>
    %c0_3 = arith.constant 0 : index
    %c0_4 = arith.constant 0 : index
    %4 = vector.load %arg3[%c0_3, %c0_4] : memref<768x256xbf16, #tpu.memory_space<vmem>>, vector<768x256xbf16>
    %cst = arith.constant dense<0.000000e+00> : vector<16x256xf32>
    %5 = tpu.matmul %3, %4, %cst {dimension_numbers = #tpu.dot_dimension_numbers<[1], [0], [0], [1], [0, 0, 1, 1], [], []>} : vector<16x768xbf16>, vector<768x256xbf16>, vector<16x256xf32> -> vector<16x256xf32>
    %c0_5 = arith.constant 0 : index
    %c0_6 = arith.constant 0 : index
    %6 = vector.load %arg4[%c0_5, %c0_6] : memref<1x256xf32, #tpu.memory_space<vmem>>, vector<1x256xf32>
    %7 = vector.broadcast %6 : vector<1x256xf32> to vector<16x256xf32>
    %8 = arith.addf %5, %7 : vector<16x256xf32>
    %cst_7 = arith.constant 5.000000e-01 : f32
    %9 = vector.broadcast %cst_7 : f32 to vector<16x256xf32>
    %10 = arith.mulf %9, %8 : vector<16x256xf32>
    %cst_8 = arith.constant 0.707106769 : f32
    %11 = vector.broadcast %cst_8 : f32 to vector<16x256xf32>
    %12 = arith.mulf %8, %11 : vector<16x256xf32>
    %13 = math.erf %12 : vector<16x256xf32>
    %cst_9 = arith.constant 1.000000e+00 : f32
    %14 = vector.broadcast %cst_9 : f32 to vector<16x256xf32>
    %15 = arith.addf %14, %13 : vector<16x256xf32>
    %16 = arith.mulf %10, %15 : vector<16x256xf32>
    %17 = arith.truncf %16 : vector<16x256xf32> to vector<16x256xbf16>
    %c0_10 = arith.constant 0 : index
    %c0_11 = arith.constant 0 : index
    %18 = vector.load %arg5[%c0_10, %c0_11] : memref<256x256xbf16, #tpu.memory_space<vmem>>, vector<256x256xbf16>
    %cst_12 = arith.constant dense<0.000000e+00> : vector<16x256xf32>
    %19 = tpu.matmul %17, %18, %cst_12 {dimension_numbers = #tpu.dot_dimension_numbers<[1], [0], [0], [1], [0, 0, 1, 1], [], []>} : vector<16x256xbf16>, vector<256x256xbf16>, vector<16x256xf32> -> vector<16x256xf32>
    %c0_13 = arith.constant 0 : index
    %c0_14 = arith.constant 0 : index
    %20 = vector.load %arg6[%c0_13, %c0_14] : memref<1x256xf32, #tpu.memory_space<vmem>>, vector<1x256xf32>
    %21 = vector.broadcast %20 : vector<1x256xf32> to vector<16x256xf32>
    %22 = arith.addf %19, %21 : vector<16x256xf32>
    %cst_15 = arith.constant 5.000000e-01 : f32
    %23 = vector.broadcast %cst_15 : f32 to vector<16x256xf32>
    %24 = arith.mulf %23, %22 : vector<16x256xf32>
    %cst_16 = arith.constant 0.707106769 : f32
    %25 = vector.broadcast %cst_16 : f32 to vector<16x256xf32>
    %26 = arith.mulf %22, %25 : vector<16x256xf32>
    %27 = math.erf %26 : vector<16x256xf32>
    %cst_17 = arith.constant 1.000000e+00 : f32
    %28 = vector.broadcast %cst_17 : f32 to vector<16x256xf32>
    %29 = arith.addf %28, %27 : vector<16x256xf32>
    %30 = arith.mulf %24, %29 : vector<16x256xf32>
    %31 = arith.truncf %30 : vector<16x256xf32> to vector<16x256xbf16>
    %c0_18 = arith.constant 0 : index
    %c0_19 = arith.constant 0 : index
    %32 = vector.load %arg7[%c0_18, %c0_19] : memref<256x128xbf16, #tpu.memory_space<vmem>>, vector<256x128xbf16>
    %cst_20 = arith.constant dense<0.000000e+00> : vector<16x128xf32>
    %33 = tpu.matmul %31, %32, %cst_20 {dimension_numbers = #tpu.dot_dimension_numbers<[1], [0], [0], [1], [0, 0, 1, 1], [], []>} : vector<16x256xbf16>, vector<256x128xbf16>, vector<16x128xf32> -> vector<16x128xf32>
    %c0_21 = arith.constant 0 : index
    %c0_22 = arith.constant 0 : index
    %34 = vector.load %arg8[%c0_21, %c0_22] : memref<1x128xf32, #tpu.memory_space<vmem>>, vector<1x128xf32>
    %35 = vector.broadcast %34 : vector<1x128xf32> to vector<16x128xf32>
    %36 = arith.addf %33, %35 : vector<16x128xf32>
    %37 = vector.extract_strided_slice %36 {offsets = [0, 0], sizes = [8, 128], strides = [1, 1]} : vector<16x128xf32> to vector<8x128xf32>
    %c0_23 = arith.constant 0 : index
    %c0_24 = arith.constant 0 : index
    %38 = vector.load %arg9[%c0_23, %c0_24] : memref<8x128xf32, #tpu.memory_space<vmem>>, vector<8x128xf32>
    tpu.vector_store %arg9[%c0_23, %c0_24], %37 {strides = array<i32>} : memref<8x128xf32, #tpu.memory_space<vmem>>, vector<8x128xf32>,
    %39 = vector.extract_strided_slice %36 {offsets = [8, 0], sizes = [8, 128], strides = [1, 1]} : vector<16x128xf32> to vector<8x128xf32>
    %c0_25 = arith.constant 0 : index
    %c0_26 = arith.constant 0 : index
    %40 = vector.load %arg10[%c0_25, %c0_26] : memref<8x128xf32, #tpu.memory_space<vmem>>, vector<8x128xf32>
    tpu.vector_store %arg10[%c0_25, %c0_26], %39 {strides = array<i32>} : memref<8x128xf32, #tpu.memory_space<vmem>>, vector<8x128xf32>,
    return
  }
  func.func @transform_0(%arg0: i32) -> (i32, i32) {
    %c0_i32 = arith.constant 0 : i32
    %c0_i32_0 = arith.constant 0 : i32
    return %arg0, %c0_i32 : i32, i32
  }
  func.func @transform_1(%arg0: i32) -> (i32, i32) {
    %c0_i32 = arith.constant 0 : i32
    %c0_i32_0 = arith.constant 0 : i32
    return %arg0, %c0_i32 : i32, i32
  }
  func.func @transform_2(%arg0: i32) -> (i32, i32) {
    %c0_i32 = arith.constant 0 : i32
    %c0_i32_0 = arith.constant 0 : i32
    %c0_i32_1 = arith.constant 0 : i32
    return %c0_i32, %c0_i32_0 : i32, i32
  }
  func.func @transform_3(%arg0: i32) -> (i32, i32) {
    %c0_i32 = arith.constant 0 : i32
    %c0_i32_0 = arith.constant 0 : i32
    %c0_i32_1 = arith.constant 0 : i32
    return %c0_i32, %c0_i32_0 : i32, i32
  }
  func.func @transform_4(%arg0: i32) -> (i32, i32) {
    %c0_i32 = arith.constant 0 : i32
    %c0_i32_0 = arith.constant 0 : i32
    %c0_i32_1 = arith.constant 0 : i32
    return %c0_i32, %c0_i32_0 : i32, i32
  }
  func.func @transform_5(%arg0: i32) -> (i32, i32) {
    %c0_i32 = arith.constant 0 : i32
    %c0_i32_0 = arith.constant 0 : i32
    %c0_i32_1 = arith.constant 0 : i32
    return %c0_i32, %c0_i32_0 : i32, i32
  }
  func.func @transform_6(%arg0: i32) -> (i32, i32) {
    %c0_i32 = arith.constant 0 : i32
    %c0_i32_0 = arith.constant 0 : i32
    %c0_i32_1 = arith.constant 0 : i32
    return %c0_i32, %c0_i32_0 : i32, i32
  }
  func.func @transform_7(%arg0: i32) -> (i32, i32) {
    %c0_i32 = arith.constant 0 : i32
    %c0_i32_0 = arith.constant 0 : i32
    %c0_i32_1 = arith.constant 0 : i32
    return %c0_i32, %c0_i32_0 : i32, i32
  }
  func.func @transform_8(%arg0: i32) -> (i32, i32) {
    %c0_i32 = arith.constant 0 : i32
    %c0_i32_0 = arith.constant 0 : i32
    return %arg0, %c0_i32 : i32, i32
  }
  func.func @transform_9(%arg0: i32) -> (i32, i32) {
    %c0_i32 = arith.constant 0 : i32
    %c0_i32_0 = arith.constant 0 : i32
    return %arg0, %c0_i32 : i32, i32
  }
}

</mosaic_0001>

<bundles_post_ra>
// kernel: verifier_forward.1
= control target key start
LH: loop header
LB: loop body
LE: loop exit
PB: predicated region body
PF: predicated region fallthrough
CT: control target
= control target key end

     0   :  { %15 = vsyncpa [#allocation3], 0  ;;  %s2948_s0 = inlined_call_operand.hbm [shape: f32[8,768], index: 0, kind: input, shape index: {}]   ;;  %s2949_s1 = inlined_call_operand.hbm [shape: f32[8,768], index: 1, kind: input, shape index: {}]   ;;  %s2950_s2 = inlined_call_operand.hbm [shape: bf16[768,256], index: 2, kind: input, shape index: {}]   ;;  %s2951_s3 = inlined_call_operand.vmem [shape: f32[1,256], index: 3, kind: input, shape index: {}]   ;;  %s2952_s4 = inlined_call_operand.hbm [shape: bf16[256,256], index: 4, kind: input, shape index: {}]   ;;  %s2953_s5 = inlined_call_operand.vmem [shape: f32[1,256], index: 5, kind: input, shape index: {}]   ;;  %s2954_s6 = inlined_call_operand.hbm [shape: bf16[256,128], index: 6, kind: input, shape index: {}]   ;;  %s2955_s7 = inlined_call_operand.vmem [shape: f32[1,128], index: 7, kind: input, shape index: {}]   ;;  %s2956_s8 = inlined_call_operand.hbm [shape: f32[8,128], index: 8, kind: output, shape index: {0}]   ;;  %s2957_s9 = inlined_call_operand.hbm [shape: f32[8,128], index: 9, kind: output, shape index: {1}]  }
   0x1   :  { %16 = vsyncpa [#allocation6], 0 }
   0x2   :  { %17 = vsyncpa [#allocation9], 0 }
   0x3   :  { %18 = vsyncpa [#allocation4], 0  ;;  %s36_s11 = sshll.u32 %s2949_s1, 4  ;;  %s37_s11 = int_to_ptr.hbm [resolvable:$true] %s36_s11 }
   0x4   :  { %19 = vsyncpa [#allocation13], 0  ;;  %s2616_s12 = smov [#allocation5]   ;;  %s61_s16 = sshll.u32 %s2952_s4, 4  ;;  %s62_s16 = int_to_ptr.hbm [resolvable:$true] %s61_s16 }
   0x5   :  { %s38_s13 = sshll.u32 %s2616_s12, 4  ;;  %s2617_s17 = smov [#allocation8]   ;;  %s39_s13 = int_to_ptr.vmem [resolvable:$true] %s38_s13 }
   0x6   :  { %41 = dma.hbm_to_vmem [thread:$0]  %s37_s11, 768, %s39_s13, [#allocation6]  }
   0x7   :  { %s63_s18 = sshll.u32 %s2617_s17, 4  ;;  %s25_s21 = sshll.u32 %s2948_s0, 4  ;;  %s64_s18 = int_to_ptr.vmem [resolvable:$true] %s63_s18  ;;  %s26_s21 = int_to_ptr.hbm [resolvable:$true] %s25_s21 }
   0x8   :  { %s2618_s1 = smov 128   ;;  %s2619_s22 = smov 8  }
   0x9   :  { %69 = dma.hbm_to_vmem [thread:$0]  %s62_s16, 4096, %s64_s18, [#allocation9], %s2618_s1, %s2618_s1, %s2619_s22  }
   0xa   :  { %s46_s25 = sshll.u32 %s2950_s2, 4  ;;  %s2620_s26 = smov [#allocation2]   ;;  %s47_s25 = int_to_ptr.hbm [resolvable:$true] %s46_s25 }
   0xb   :  { %s27_s27 = sshll.u32 %s2620_s26, 4  ;;  %s2621_s4 = smov [#allocation7]   ;;  %s28_s27 = int_to_ptr.vmem [resolvable:$true] %s27_s27 }
   0xc   :  { %30 = dma.hbm_to_vmem [thread:$0]  %s26_s21, 768, %s28_s27, [#allocation3]  }
   0xd   :  { %s48_s28 = sshll.u32 %s2621_s4, 4  ;;  %s76_s0 = sshll.u32 %s2954_s6, 4  ;;  %s49_s28 = int_to_ptr.vmem [resolvable:$true] %s48_s28  ;;  %s77_s0 = int_to_ptr.hbm [resolvable:$true] %s76_s0 }
   0xe   :  { %54 = dma.hbm_to_vmem [thread:$0]  %s47_s25, 12288, %s49_s28, [#allocation6], %s2618_s1, %s2618_s1, %s2619_s22  }
   0xf   :  { %s2622_s10 = smov [#allocation10]   ;;  %s2623_s12 = smov 64  }
  0x10   :  { %s78_s11 = sshll.u32 %s2622_s10, 4  ;;  %s2624_s13 = smov 4   ;;  %s79_s11 = int_to_ptr.vmem [resolvable:$true] %s78_s11 }
  0x11   :  { %84 = dma.hbm_to_vmem [thread:$0]  %s77_s0, 2048, %s79_s11, [#allocation9], %s2623_s12, %s2623_s12, %s2624_s13  }
  0x12   :  { %2606 = dma.done.wait [#allocation3], 768  }
  0x13   :  { %2607 = vsyncadd [#allocation3], 4294966528 }
  0x14   :  { %2608 = dma.done.wait [#allocation6], 13056  }
  0x15   :  { %2609 = vsyncadd [#allocation6], 4294954240 }
  0x16   :  { %2610 = dma.done.wait [#allocation9], 6144  }
  0x17   :  { %2611 = vsyncadd [#allocation9], 4294961152  ;;  %v1740_v0 = vld [vmem:[#allocation7 + $0x70] sm:$0xf]  ;;  %v2281_v1 = vld [vmem:[#allocation7 + $0x74] sm:$0xf0] }
  0x18   :  { %v1804_v2 = vld [vmem:[#allocation7 + $0xf0] sm:$0xf]  ;;  %v1741_v3 = vor.u32 %v2281_v1, %v1740_v0  ;;  %v2297_v4 = vld [vmem:[#allocation7 + $0xf4] sm:$0xf0]  ;;  %v1732_v11 = vld [vmem:[#allocation7 + $0x60] sm:$0xf] }
  0x19   :  { %v1868_v5 = vld [vmem:[#allocation7 + $0x170] sm:$0xf]  ;;  %v2313_v6 = vld [vmem:[#allocation7 + $0x174] sm:$0xf0]  ;;  %v1805_v7 = vor.u32 %v2297_v4, %v1804_v2  ;;  %v2279_v13 = vld [vmem:[#allocation7 + $0x64] sm:$0xf0] }
  0x1a   :  { %v1869_v8 = vor.u32 %v2313_v6, %v1868_v5  ;;  %v1932_v9 = vld [vmem:[#allocation7 + $0x1f0] sm:$0xf]  ;;  %v2329_v10 = vld [vmem:[#allocation7 + $0x1f4] sm:$0xf0]  ;;  %707 = vmatpush.bf16.msra.mxu0 %v1741_v3  ;;  %v1796_v14 = vld [vmem:[#allocation7 + $0xe0] sm:$0xf]  ;;  %v1733_v16 = vor.u32 %v2279_v13, %v1732_v11 }
  0x1b   :  { %v1933_v12 = vor.u32 %v2329_v10, %v1932_v9  ;;  %v2295_v15 = vld [vmem:[#allocation7 + $0xe4] sm:$0xf0]  ;;  %721 = vmatpush.bf16.msra.mxu1 %v1805_v7  ;;  %v1860_v18 = vld [vmem:[#allocation7 + $0x160] sm:$0xf]  ;;  %v1724_v23 = vld [vmem:[#allocation7 + $0x50] sm:$0xf] }
  0x1c   :  { %735 = vmatpush.bf16.msra.mxu2 %v1869_v8  ;;  %v1797_v17 = vor.u32 %v2295_v15, %v1796_v14  ;;  %v2311_v19 = vld [vmem:[#allocation7 + $0x164] sm:$0xf0]  ;;  %v1924_v20 = vld [vmem:[#allocation7 + $0x1e0] sm:$0xf]  ;;  %v2277_v24 = vld [vmem:[#allocation7 + $0x54] sm:$0xf0] }
  0x1d   :  { %749 = vmatpush.bf16.msra.mxu3 %v1933_v12  ;;  %v1861_v21 = vor.u32 %v2311_v19, %v1860_v18  ;;  %v2327_v22 = vld [vmem:[#allocation7 + $0x1e4] sm:$0xf0]  ;;  %v1788_v26 = vld [vmem:[#allocation7 + $0xd0] sm:$0xf]  ;;  %v2293_v27 = vld [vmem:[#allocation7 + $0xd4] sm:$0xf0]  ;;  %v1725_v29 = vor.u32 %v2277_v24, %v1724_v23 }
  0x1e   :  { %v1925_v25 = vor.u32 %v2327_v22, %v1924_v20  ;;  %v1852_v28 = vld [vmem:[#allocation7 + $0x150] sm:$0xf]  ;;  %708 = vmatpush.bf16.msra.mxu0 %v1733_v16  ;;  %v2309_v30 = vld [vmem:[#allocation7 + $0x154] sm:$0xf0]  ;;  %v1789_v33 = vor.u32 %v2293_v27, %v1788_v26  ;;  %v1716_v35 = vld [vmem:[#allocation7 + $0x40] sm:$0xf] }
  0x1f   :  { %v1916_v31 = vld [vmem:[#allocation7 + $0x1d0] sm:$0xf]  ;;  %v2325_v32 = vld [vmem:[#allocation7 + $0x1d4] sm:$0xf0]  ;;  %722 = vmatpush.bf16.msra.mxu1 %v1797_v17  ;;  %v1853_v34 = vor.u32 %v2309_v30, %v1852_v28  ;;  %v2275_v36 = vld [vmem:[#allocation7 + $0x44] sm:$0xf0] }
  0x20   :  { %736 = vmatpush.bf16.msra.mxu2 %v1861_v21  ;;  %v1780_v37 = vld [vmem:[#allocation7 + $0xc0] sm:$0xf]  ;;  %v1917_v38 = vor.u32 %v2325_v32, %v1916_v31  ;;  %v2291_v39 = vld [vmem:[#allocation7 + $0xc4] sm:$0xf0]  ;;  %v1717_v44 = vor.u32 %v2275_v36, %v1716_v35  ;;  %v1708_v47 = vld [vmem:[#allocation7 + $0x30] sm:$0xf] }
  0x21   :  { %750 = vmatpush.bf16.msra.mxu3 %v1925_v25  ;;  %v1844_v40 = vld [vmem:[#allocation7 + $0x140] sm:$0xf]  ;;  %v2307_v41 = vld [vmem:[#allocation7 + $0x144] sm:$0xf0]  ;;  %v1781_v45 = vor.u32 %v2291_v39, %v1780_v37  ;;  %v2273_v48 = vld [vmem:[#allocation7 + $0x34] sm:$0xf0] }
  0x22   :  { %v1908_v42 = vld [vmem:[#allocation7 + $0x1c0] sm:$0xf]  ;;  %v2323_v43 = vld [vmem:[#allocation7 + $0x1c4] sm:$0xf0]  ;;  %709 = vmatpush.bf16.msra.mxu0 %v1725_v29  ;;  %v1845_v46 = vor.u32 %v2307_v41, %v1844_v40  ;;  %v1772_v49 = vld [vmem:[#allocation7 + $0xb0] sm:$0xf]  ;;  %v1709_v56 = vor.u32 %v2273_v48, %v1708_v47 }
  0x23   :  { %723 = vmatpush.bf16.msra.mxu1 %v1789_v33  ;;  %v1909_v50 = vor.u32 %v2323_v43, %v1908_v42  ;;  %v2289_v51 = vld [vmem:[#allocation7 + $0xb4] sm:$0xf0]  ;;  %v1836_v52 = vld [vmem:[#allocation7 + $0x130] sm:$0xf]  ;;  %v1700_v59 = vld [vmem:[#allocation7 + $0x20] sm:$0xf] }
  0x24   :  { %737 = vmatpush.bf16.msra.mxu2 %v1853_v34  ;;  %v2305_v53 = vld [vmem:[#allocation7 + $0x134] sm:$0xf0]  ;;  %v1900_v54 = vld [vmem:[#allocation7 + $0x1b0] sm:$0xf]  ;;  %v1773_v57 = vor.u32 %v2289_v51, %v1772_v49  ;;  %v2271_v60 = vld [vmem:[#allocation7 + $0x24] sm:$0xf0] }
  0x25   :  { %751 = vmatpush.bf16.msra.mxu3 %v1917_v38  ;;  %v2321_v55 = vld [vmem:[#allocation7 + $0x1b4] sm:$0xf0]  ;;  %v1837_v58 = vor.u32 %v2305_v53, %v1836_v52  ;;  %v1764_v61 = vld [vmem:[#allocation7 + $0xa0] sm:$0xf]  ;;  %v2287_v63 = vld [vmem:[#allocation7 + $0xa4] sm:$0xf0]  ;;  %v1701_v4 = vor.u32 %v2271_v60, %v1700_v59 }
  0x26   :  { %710 = vmatpush.bf16.msra.mxu0 %v1717_v44  ;;  %v1901_v62 = vor.u32 %v2321_v55, %v1900_v54  ;;  %v1828_v0 = vld [vmem:[#allocation7 + $0x120] sm:$0xf]  ;;  %v2303_v1 = vld [vmem:[#allocation7 + $0x124] sm:$0xf0]  ;;  %v1765_v5 = vor.u32 %v2287_v63, %v1764_v61  ;;  %v1692_v7 = vld [vmem:[#allocation7 + $0x10] sm:$0xf] }
  0x27   :  { %724 = vmatpush.bf16.msra.mxu1 %v1781_v45  ;;  %v1892_v2 = vld [vmem:[#allocation7 + $0x1a0] sm:$0xf]  ;;  %v2319_v3 = vld [vmem:[#allocation7 + $0x1a4] sm:$0xf0]  ;;  %v1829_v6 = vor.u32 %v2303_v1, %v1828_v0  ;;  %v2269_v8 = vld [vmem:[#allocation7 + $0x14] sm:$0xf0] }
  0x28   :  { %738 = vmatpush.bf16.msra.mxu2 %v1845_v46  ;;  %v1756_v9 = vld [vmem:[#allocation7 + $0x90] sm:$0xf]  ;;  %v1893_v10 = vor.u32 %v2319_v3, %v1892_v2  ;;  %v2285_v11 = vld [vmem:[#allocation7 + $0x94] sm:$0xf0]  ;;  %v1693_v16 = vor.u32 %v2269_v8, %v1692_v7  ;;  %v1684_v17 = vld [vmem:[#allocation7] sm:$0xf] }
  0x29   :  { %752 = vmatpush.bf16.msra.mxu3 %v1909_v50  ;;  %v1820_v12 = vld [vmem:[#allocation7 + $0x110] sm:$0xf]  ;;  %v2301_v13 = vld [vmem:[#allocation7 + $0x114] sm:$0xf0]  ;;  %v2267_v18 = vld [vmem:[#allocation7 + $0x4] sm:$0xf0]  ;;  %v1757_v19 = vor.u32 %v2285_v11, %v1756_v9 }
  0x2a   :  { %711 = vmatpush.bf16.msra.mxu0 %v1709_v56  ;;  %v1884_v14 = vld [vmem:[#allocation7 + $0x190] sm:$0xf]  ;;  %v2317_v15 = vld [vmem:[#allocation7 + $0x194] sm:$0xf0]  ;;  %v1821_v20 = vor.u32 %v2301_v13, %v1820_v12  ;;  %v1748_v21 = vld [vmem:[#allocation7 + $0x80] sm:$0xf]  ;;  %v1685_v31 = vor.u32 %v2267_v18, %v1684_v17 }
  0x2b   :  { %725 = vmatpush.bf16.msra.mxu1 %v1773_v57  ;;  %v2283_v22 = vld [vmem:[#allocation7 + $0x84] sm:$0xf0]  ;;  %v1812_v23 = vld [vmem:[#allocation7 + $0x100] sm:$0xf]  ;;  %v1885_v24 = vor.u32 %v2317_v15, %v1884_v14  ;;  %v1996_v28 = vld [vmem:[#allocation7 + $0x270] sm:$0xf] }
  0x2c   :  { %739 = vmatpush.bf16.msra.mxu2 %v1837_v58  ;;  %v2299_v25 = vld [vmem:[#allocation7 + $0x104] sm:$0xf0]  ;;  %v1876_v26 = vld [vmem:[#allocation7 + $0x180] sm:$0xf]  ;;  %v2345_v29 = vld [vmem:[#allocation7 + $0x274] sm:$0xf0]  ;;  %v1749_v35 = vor.u32 %v2283_v22, %v1748_v21 }
  0x2d   :  { %753 = vmatpush.bf16.msra.mxu3 %v1901_v62  ;;  %v2315_v27 = vld [vmem:[#allocation7 + $0x184] sm:$0xf0]  ;;  %v2060_v30 = vld [vmem:[#allocation7 + $0x2f0] sm:$0xf]  ;;  %v2361_v32 = vld [vmem:[#allocation7 + $0x2f4] sm:$0xf0]  ;;  %v1813_v36 = vor.u32 %v2299_v25, %v1812_v23  ;;  %v1997_v40 = vor.u32 %v2345_v29, %v1996_v28 }
  0x2e   :  { %712 = vmatpush.bf16.msra.mxu0 %v1701_v4  ;;  %v2280_v33 = vld [vmem:[#allocation7 + $0x74] sm:$0xf]  ;;  %v1742_v34 = vld [vmem:[#allocation7 + $0x78] sm:$0xf0]  ;;  %v1877_v39 = vor.u32 %v2315_v27, %v1876_v26  ;;  %v1988_v41 = vld [vmem:[#allocation7 + $0x260] sm:$0xf]  ;;  %v2061_v42 = vor.u32 %v2361_v32, %v2060_v30 }
  0x2f   :  { %726 = vmatpush.bf16.msra.mxu1 %v1765_v5  ;;  %v2296_v37 = vld [vmem:[#allocation7 + $0xf4] sm:$0xf]  ;;  %v1806_v38 = vld [vmem:[#allocation7 + $0xf8] sm:$0xf0]  ;;  %v1745_v43 = vor.u32 %v2280_v33, %v1742_v34  ;;  %v2343_v44 = vld [vmem:[#allocation7 + $0x264] sm:$0xf0] }
  0x30   :  { %740 = vmatpush.bf16.msra.mxu2 %v1829_v6  ;;  %v2052_v45 = vld [vmem:[#allocation7 + $0x2e0] sm:$0xf]  ;;  %v2359_v46 = vld [vmem:[#allocation7 + $0x2e4] sm:$0xf0]  ;;  %v1809_v47 = vor.u32 %v2296_v37, %v1806_v38  ;;  %v2278_v48 = vld [vmem:[#allocation7 + $0x64] sm:$0xf]  ;;  %v1989_v54 = vor.u32 %v2343_v44, %v1988_v41 }
  0x31   :  { %754 = vmatpush.bf16.msra.mxu3 %v1893_v10  ;;  %v1734_v49 = vld [vmem:[#allocation7 + $0x68] sm:$0xf0]  ;;  %v2294_v50 = vld [vmem:[#allocation7 + $0xe4] sm:$0xf]  ;;  %v113_v53 = vld [vmem:[#allocation5] sm:$0xff]  ;;  %v2053_v59 = vor.u32 %v2359_v46, %v2052_v45  ;;  %s2625_s16 = smov [#allocation11]  }
  0x32   :  { %713 = vmatpush.bf16.msra.mxu0 %v1693_v16  ;;  %v1798_v51 = vld [vmem:[#allocation7 + $0xe8] sm:$0xf0]  ;;  %v107_v52 = vld [vmem:[#allocation2] sm:$0xff]  ;;  %v1980_v55 = vld [vmem:[#allocation7 + $0x250] sm:$0xf]  ;;  %v1737_v60 = vor.u32 %v2278_v48, %v1734_v49  ;;  %s1652_s17 = sshll.u32 %s2625_s16, 4  ;;  %s1653_s17 = int_to_ptr.vmem [resolvable:$true] %s1652_s17 }
  0x33   :  { %727 = vmatpush.bf16.msra.mxu1 %v1757_v19  ;;  %v2341_v56 = vld [vmem:[#allocation7 + $0x254] sm:$0xf0]  ;;  %v2044_v57 = vld [vmem:[#allocation7 + $0x2d0] sm:$0xf]  ;;  %v2692_v58 = vpack.c.bf16 %v113_v53, %v107_v52  ;;  %v2276_v62 = vld [vmem:[#allocation7 + $0x54] sm:$0xf]  ;;  %v1801_v0 = vor.u32 %v2294_v50, %v1798_v51 }
  0x34   :  { %741 = vmatpush.bf16.msra.mxu2 %v1821_v20  ;;  %v2357_v61 = vld [vmem:[#allocation7 + $0x2d4] sm:$0xf0]  ;;  %v1726_v63 = vld [vmem:[#allocation7 + $0x58] sm:$0xf0]  ;;  %v2292_v1 = vld [vmem:[#allocation7 + $0xd4] sm:$0xf]  ;;  %v1981_v8 = vor.u32 %v2341_v56, %v1980_v55 }
  0x35   :  { %755 = vmatpush.bf16.msra.mxu3 %v1885_v24  ;;  %v108_v2 = vld [vmem:[#allocation2 + $0x8] sm:$0xff]  ;;  %v114_v3 = vld [vmem:[#allocation5 + $0x8] sm:$0xff]  ;;  %v109_v6 = vld [vmem:[#allocation2 + $0x10] sm:$0xff]  ;;  %v2045_v12 = vor.u32 %v2357_v61, %v2044_v57  ;;  %v1729_v13 = vor.u32 %v2276_v62, %v1726_v63  ;;  %s1654_s20 = sshll.u32 %s2956_s8, 4  ;;  %s2626_s21 = smov [#allocation12]   ;;  %s1655_s20 = int_to_ptr.hbm [resolvable:$true] %s1654_s20 }
  0x36   :  { %714 = vmatpush.bf16.msra.mxu0 %v1685_v31  ;;  %v1790_v4 = vld [vmem:[#allocation7 + $0xd8] sm:$0xf0]  ;;  %v2695_v5 = vpack.c.bf16 %v114_v3, %v108_v2  ;;  %v115_v7 = vld [vmem:[#allocation5 + $0x10] sm:$0xff]  ;;  %v2339_v10 = vld [vmem:[#allocation7 + $0x244] sm:$0xf0]  ;;  %s1663_s1 = sshll.u32 %s2626_s21, 4  ;;  %s1664_s1 = int_to_ptr.vmem [resolvable:$true] %s1663_s1 }
  0x37   :  { %728 = vmatpush.bf16.msra.mxu1 %v1749_v35  ;;  %v1972_v9 = vld [vmem:[#allocation7 + $0x240] sm:$0xf]  ;;  %v2697_v11 = vpack.c.bf16 %v115_v7, %v109_v6  ;;  %v2355_v15 = vld [vmem:[#allocation7 + $0x2c4] sm:$0xf0]  ;;  %v2274_v16 = vld [vmem:[#allocation7 + $0x44] sm:$0xf]  ;;  %v1793_v17 = vor.u32 %v2292_v1, %v1790_v4 }
  0x38   :  { %742 = vmatpush.bf16.msra.mxu2 %v1813_v36  ;;  %v2036_v14 = vld [vmem:[#allocation7 + $0x2c0] sm:$0xf]  ;;  %v1718_v18 = vld [vmem:[#allocation7 + $0x48] sm:$0xf0]  ;;  %v110_v19 = vld [vmem:[#allocation2 + $0x18] sm:$0xff]  ;;  %v1973_v24 = vor.u32 %v2339_v10, %v1972_v9 }
  0x39   :  { %756 = vmatpush.bf16.msra.mxu3 %v1877_v39  ;;  %715 = vmatmul.bf16.vlgmr.msra.gmra.mxu0 %v2692_v58  ;;  %v116_v20 = vld [vmem:[#allocation5 + $0x18] sm:$0xff]  ;;  %v2290_v21 = vld [vmem:[#allocation7 + $0xc4] sm:$0xf]  ;;  %v2037_v25 = vor.u32 %v2355_v15, %v2036_v14  ;;  %v1721_v26 = vor.u32 %v2274_v16, %v1718_v18  ;;  %v1964_v27 = vld [vmem:[#allocation7 + $0x230] sm:$0xf] }
  0x3a   :  { %763 = vmatpush.bf16.msrb.mxu0 %v1997_v40  ;;  %729 = vmatmul.bf16.vlgmr.msra.gmra.mxu1 %v2695_v5  ;;  %v1782_v22 = vld [vmem:[#allocation7 + $0xc8] sm:$0xf0]  ;;  %v2701_v23 = vpack.c.bf16 %v116_v20, %v110_v19  ;;  %v2337_v28 = vld [vmem:[#allocation7 + $0x234] sm:$0xf0]  ;;  %v2028_v29 = vld [vmem:[#allocation7 + $0x2b0] sm:$0xf] }
  0x3b   :  { %777 = vmatpush.bf16.msrb.mxu1 %v2061_v42  ;;  %743 = vmatmul.bf16.vlgmr.msra.gmra.mxu2 %v2697_v11  ;;  %v1785_v30 = vor.u32 %v2290_v21, %v1782_v22  ;;  %v2353_v31 = vld [vmem:[#allocation7 + $0x2b4] sm:$0xf0]  ;;  %v2272_v32 = vld [vmem:[#allocation7 + $0x34] sm:$0xf]  ;;  %v1710_v33 = vld [vmem:[#allocation7 + $0x38] sm:$0xf0]  ;;  %v1965_v36 = vor.u32 %v2337_v28, %v1964_v27 }
  0x3c   :  { %791 = vmatpush.bf16.msrb.mxu2 %v1745_v43  ;;  %v2288_v34 = vld [vmem:[#allocation7 + $0xb4] sm:$0xf]  ;;  %v1774_v35 = vld [vmem:[#allocation7 + $0xb8] sm:$0xf0]  ;;  %757 = vmatmul.bf16.vlgmr.msra.gmra.mxu3 %v2701_v23  ;;  %v2029_v37 = vor.u32 %v2353_v31, %v2028_v29  ;;  %v1713_v38 = vor.u32 %v2272_v32, %v1710_v33  ;;  %v1956_v39 = vld [vmem:[#allocation7 + $0x220] sm:$0xf] }
  0x3d   :  { %805 = vmatpush.bf16.msrb.mxu3 %v1809_v47  ;;  %v2335_v40 = vld [vmem:[#allocation7 + $0x224] sm:$0xf0]  ;;  %v2020_v41 = vld [vmem:[#allocation7 + $0x2a0] sm:$0xf]  ;;  %v1777_v42 = vor.u32 %v2288_v34, %v1774_v35  ;;  %v2270_v44 = vld [vmem:[#allocation7 + $0x24] sm:$0xf] }
  0x3e   :  { %764 = vmatpush.bf16.msrb.mxu0 %v1989_v54  ;;  %v2351_v43 = vld [vmem:[#allocation7 + $0x2a4] sm:$0xf0]  ;;  %v1702_v45 = vld [vmem:[#allocation7 + $0x28] sm:$0xf0]  ;;  %v2286_v46 = vld [vmem:[#allocation7 + $0xa4] sm:$0xf]  ;;  %v1957_v48 = vor.u32 %v2335_v40, %v1956_v39 }
  0x3f   :  { %778 = vmatpush.bf16.msrb.mxu1 %v2053_v59  ;;  %v1766_v47 = vld [vmem:[#allocation7 + $0xa8] sm:$0xf0]  ;;  %v2021_v49 = vor.u32 %v2351_v43, %v2020_v41  ;;  %v1705_v50 = vor.u32 %v2270_v44, %v1702_v45  ;;  %v1948_v51 = vld [vmem:[#allocation7 + $0x210] sm:$0xf]  ;;  %v2333_v52 = vld [vmem:[#allocation7 + $0x214] sm:$0xf0] }
  0x40   :  { %792 = vmatpush.bf16.msrb.mxu2 %v1737_v60  ;;  %v2012_v53 = vld [vmem:[#allocation7 + $0x290] sm:$0xf]  ;;  %v1769_v54 = vor.u32 %v2286_v46, %v1766_v47  ;;  %v2349_v55 = vld [vmem:[#allocation7 + $0x294] sm:$0xf0]  ;;  %v2268_v56 = vld [vmem:[#allocation7 + $0x14] sm:$0xf]  ;;  %v1949_v61 = vor.u32 %v2333_v52, %v1948_v51 }
  0x41   :  { %806 = vmatpush.bf16.msrb.mxu3 %v1801_v0  ;;  %v1694_v57 = vld [vmem:[#allocation7 + $0x18] sm:$0xf0]  ;;  %v2284_v59 = vld [vmem:[#allocation7 + $0x94] sm:$0xf]  ;;  %v1940_v62 = vld [vmem:[#allocation7 + $0x200] sm:$0xf]  ;;  %v2013_v1 = vor.u32 %v2349_v55, %v2012_v53 }
  0x42   :  { %765 = vmatpush.bf16.msrb.mxu0 %v1981_v8  ;;  %v1758_v60 = vld [vmem:[#allocation7 + $0x98] sm:$0xf0]  ;;  %v2331_v63 = vld [vmem:[#allocation7 + $0x204] sm:$0xf0]  ;;  %v2004_v0 = vld [vmem:[#allocation7 + $0x280] sm:$0xf]  ;;  %v1697_v2 = vor.u32 %v2268_v56, %v1694_v57 }
  0x43   :  { %779 = vmatpush.bf16.msrb.mxu1 %v2045_v12  ;;  %v2347_v3 = vld [vmem:[#allocation7 + $0x284] sm:$0xf0]  ;;  %v2266_v4 = vld [vmem:[#allocation7 + $0x4] sm:$0xf]  ;;  %v1686_v6 = vld [vmem:[#allocation7 + $0x8] sm:$0xf0]  ;;  %v1761_v7 = vor.u32 %v2284_v59, %v1758_v60  ;;  %v1941_v15 = vor.u32 %v2331_v63, %v1940_v62 }
  0x44   :  { %793 = vmatpush.bf16.msrb.mxu2 %v1729_v13  ;;  %v2282_v8 = vld [vmem:[#allocation7 + $0x84] sm:$0xf]  ;;  %v1750_v9 = vld [vmem:[#allocation7 + $0x88] sm:$0xf0]  ;;  %v2312_v10 = vld [vmem:[#allocation7 + $0x174] sm:$0xf]  ;;  %v2005_v19 = vor.u32 %v2347_v3, %v2004_v0  ;;  %v1689_v20 = vor.u32 %v2266_v4, %v1686_v6 }
  0x45   :  { %807 = vmatpush.bf16.msrb.mxu3 %v1793_v17  ;;  %v1870_v12 = vld [vmem:[#allocation7 + $0x178] sm:$0xf0]  ;;  %v2328_v13 = vld [vmem:[#allocation7 + $0x1f4] sm:$0xf]  ;;  %v111_v22 = vld [vmem:[#allocation2 + $0x20] sm:$0xff] }
  0x46   :  { %766 = vmatpush.bf16.msrb.mxu0 %v1973_v24  ;;  %v1934_v14 = vld [vmem:[#allocation7 + $0x1f8] sm:$0xf0]  ;;  %v2344_v16 = vld [vmem:[#allocation7 + $0x274] sm:$0xf]  ;;  %v112_v27 = vld [vmem:[#allocation2 + $0x28] sm:$0xff] }
  0x47   :  { %780 = vmatpush.bf16.msrb.mxu1 %v2037_v25  ;;  %v1998_v17 = vld [vmem:[#allocation7 + $0x278] sm:$0xf0]  ;;  %v2360_v18 = vld [vmem:[#allocation7 + $0x2f4] sm:$0xf]  ;;  %v1753_v25 = vor.u32 %v2282_v8, %v1750_v9  ;;  %v1937_v29 = vor.u32 %v2328_v13, %v1934_v14  ;;  %v2310_v31 = vld [vmem:[#allocation7 + $0x164] sm:$0xf] }
  0x48   :  { %794 = vmatpush.bf16.msrb.mxu2 %v1721_v26  ;;  %v2062_v21 = vld [vmem:[#allocation7 + $0x2f8] sm:$0xf0]  ;;  %v117_v24 = vld [vmem:[#allocation5 + $0x20] sm:$0xff]  ;;  %v1873_v26 = vor.u32 %v2312_v10, %v1870_v12  ;;  %v1862_v32 = vld [vmem:[#allocation7 + $0x168] sm:$0xf0] }
  0x49   :  { %808 = vmatpush.bf16.msrb.mxu3 %v1785_v30  ;;  %v118_v28 = vld [vmem:[#allocation5 + $0x28] sm:$0xff]  ;;  %v2001_v30 = vor.u32 %v2344_v16, %v1998_v17  ;;  %v2326_v33 = vld [vmem:[#allocation7 + $0x1e4] sm:$0xf]  ;;  %v2065_v34 = vor.u32 %v2360_v18, %v2062_v21  ;;  %v2704_v35 = vpack.c.bf16 %v117_v24, %v111_v22  ;;  %v2054_v41 = vld [vmem:[#allocation7 + $0x2e8] sm:$0xf0] }
  0x4a   :  { %767 = vmatpush.bf16.msrb.mxu0 %v1965_v36  ;;  %v1926_v36 = vld [vmem:[#allocation7 + $0x1e8] sm:$0xf0]  ;;  %v2706_v39 = vpack.c.bf16 %v118_v28, %v112_v27  ;;  %v2358_v40 = vld [vmem:[#allocation7 + $0x2e4] sm:$0xf]  ;;  %v2308_v45 = vld [vmem:[#allocation7 + $0x154] sm:$0xf] }
  0x4b   :  { %781 = vmatpush.bf16.msrb.mxu1 %v2029_v37  ;;  %v2342_v37 = vld [vmem:[#allocation7 + $0x264] sm:$0xf]  ;;  %v1929_v43 = vor.u32 %v2326_v33, %v1926_v36  ;;  %v1854_v46 = vld [vmem:[#allocation7 + $0x158] sm:$0xf0]  ;;  %v2324_v47 = vld [vmem:[#allocation7 + $0x1d4] sm:$0xf] }
  0x4c   :  { %795 = vmatpush.bf16.msrb.mxu2 %v1713_v38  ;;  %v1990_v38 = vld [vmem:[#allocation7 + $0x268] sm:$0xf0]  ;;  %v1982_v51 = vld [vmem:[#allocation7 + $0x258] sm:$0xf0]  ;;  %v2356_v52 = vld [vmem:[#allocation7 + $0x2d4] sm:$0xf] }
  0x4d   :  { %809 = vmatpush.bf16.msrb.mxu3 %v1777_v42  ;;  %v1865_v42 = vor.u32 %v2310_v31, %v1862_v32  ;;  %v1993_v44 = vor.u32 %v2342_v37, %v1990_v38  ;;  %v2046_v53 = vld [vmem:[#allocation7 + $0x2d8] sm:$0xf0]  ;;  %v2306_v55 = vld [vmem:[#allocation7 + $0x144] sm:$0xf]  ;;  %v1846_v59 = vld [vmem:[#allocation7 + $0x148] sm:$0xf0] }
  0x4e   :  { %768 = vmatpush.bf16.msrb.mxu0 %v1957_v48  ;;  %v2057_v48 = vor.u32 %v2358_v40, %v2054_v41  ;;  %v2322_v60 = vld [vmem:[#allocation7 + $0x1c4] sm:$0xf]  ;;  %v1910_v62 = vld [vmem:[#allocation7 + $0x1c8] sm:$0xf0]  ;;  %v2304_v4 = vld [vmem:[#allocation7 + $0x134] sm:$0xf] }
  0x4f   :  { %782 = vmatpush.bf16.msrb.mxu1 %v2021_v49  ;;  %v1918_v49 = vld [vmem:[#allocation7 + $0x1d8] sm:$0xf0]  ;;  %v2338_v63 = vld [vmem:[#allocation7 + $0x244] sm:$0xf]  ;;  %v1974_v0 = vld [vmem:[#allocation7 + $0x248] sm:$0xf0]  ;;  %v1913_v3 = vor.u32 %v2322_v60, %v1910_v62 }
  0x50   :  { %796 = vmatpush.bf16.msrb.mxu2 %v1705_v50  ;;  %v2340_v50 = vld [vmem:[#allocation7 + $0x254] sm:$0xf]  ;;  %v1921_v56 = vor.u32 %v2324_v47, %v1918_v49  ;;  %v1838_v6 = vld [vmem:[#allocation7 + $0x138] sm:$0xf0]  ;;  %v2302_v18 = vld [vmem:[#allocation7 + $0x124] sm:$0xf] }
  0x51   :  { %810 = vmatpush.bf16.msrb.mxu3 %v1769_v54  ;;  %v1857_v54 = vor.u32 %v2308_v45, %v1854_v46  ;;  %v1985_v57 = vor.u32 %v2340_v50, %v1982_v51  ;;  %v1902_v9 = vld [vmem:[#allocation7 + $0x1b8] sm:$0xf0]  ;;  %v2336_v10 = vld [vmem:[#allocation7 + $0x234] sm:$0xf]  ;;  %v1894_v22 = vld [vmem:[#allocation7 + $0x1a8] sm:$0xf0] }
  0x52   :  { %769 = vmatpush.bf16.msrb.mxu0 %v1949_v61  ;;  %v2049_v61 = vor.u32 %v2356_v52, %v2046_v53  ;;  %v1966_v12 = vld [vmem:[#allocation7 + $0x238] sm:$0xf0]  ;;  %v2352_v13 = vld [vmem:[#allocation7 + $0x2b4] sm:$0xf]  ;;  %v2334_v24 = vld [vmem:[#allocation7 + $0x224] sm:$0xf] }
  0x53   :  { %783 = vmatpush.bf16.msrb.mxu1 %v2013_v1  ;;  %v2354_v1 = vld [vmem:[#allocation7 + $0x2c4] sm:$0xf]  ;;  %v2030_v14 = vld [vmem:[#allocation7 + $0x2b8] sm:$0xf0]  ;;  %v1969_v17 = vor.u32 %v2336_v10, %v1966_v12  ;;  %v2022_v27 = vld [vmem:[#allocation7 + $0x2a8] sm:$0xf0] }
  0x54   :  { %797 = vmatpush.bf16.msrb.mxu2 %v1697_v2  ;;  %v1849_v2 = vor.u32 %v2306_v55, %v1846_v59  ;;  %v2033_v21 = vor.u32 %v2352_v13, %v2030_v14  ;;  %v2300_v31 = vld [vmem:[#allocation7 + $0x114] sm:$0xf]  ;;  %v1822_v32 = vld [vmem:[#allocation7 + $0x118] sm:$0xf0]  ;;  %v2298_v45 = vld [vmem:[#allocation7 + $0x104] sm:$0xf] }
  0x55   :  { %811 = vmatpush.bf16.msrb.mxu3 %v1761_v7  ;;  %v2320_v7 = vld [vmem:[#allocation7 + $0x1b4] sm:$0xf]  ;;  %v1886_v36 = vld [vmem:[#allocation7 + $0x198] sm:$0xf0]  ;;  %v1814_v46 = vld [vmem:[#allocation7 + $0x108] sm:$0xf0] }
  0x56   :  { %770 = vmatpush.bf16.msrb.mxu0 %v1941_v15  ;;  %v1841_v15 = vor.u32 %v2304_v4, %v1838_v6  ;;  %v1905_v16 = vor.u32 %v2320_v7, %v1902_v9  ;;  %v2316_v33 = vld [vmem:[#allocation7 + $0x194] sm:$0xf]  ;;  %v1950_v38 = vld [vmem:[#allocation7 + $0x218] sm:$0xf0]  ;;  %v2314_v47 = vld [vmem:[#allocation7 + $0x184] sm:$0xf] }
  0x57   :  { %784 = vmatpush.bf16.msrb.mxu1 %v2005_v19  ;;  %v1830_v19 = vld [vmem:[#allocation7 + $0x128] sm:$0xf0]  ;;  %v2332_v37 = vld [vmem:[#allocation7 + $0x214] sm:$0xf]  ;;  %v2014_v41 = vld [vmem:[#allocation7 + $0x298] sm:$0xf0] }
  0x58   :  { %798 = vmatpush.bf16.msrb.mxu2 %v1689_v20  ;;  %v2318_v20 = vld [vmem:[#allocation7 + $0x1a4] sm:$0xf]  ;;  %v1833_v28 = vor.u32 %v2302_v18, %v1830_v19  ;;  %v2348_v40 = vld [vmem:[#allocation7 + $0x294] sm:$0xf]  ;;  %v1878_v49 = vld [vmem:[#allocation7 + $0x188] sm:$0xf0] }
  0x59   :  { %812 = vmatpush.bf16.msrb.mxu3 %v1753_v25  ;;  %771 = vmatmul.bf16.vlgmr.msrb.gmra.mxu0 %v2704_v35  ;;  %v1958_v25 = vld [vmem:[#allocation7 + $0x228] sm:$0xf0]  ;;  %v2330_v50 = vld [vmem:[#allocation7 + $0x204] sm:$0xf]  ;;  %v1881_v55 = vor.u32 %v2314_v47, %v1878_v49  ;;  %v2719_v59 = vld [vmem:[%s2951_s3] sm:$0x3] }
  0x5a   :  { %819 = vmatpush.bf16.msra.mxu0 %v1873_v26  ;;  %785 = vmatmul.bf16.vlgmr.msrb.gmra.mxu1 %v2706_v39  ;;  %v2350_v26 = vld [vmem:[#allocation7 + $0x2a4] sm:$0xf]  ;;  %v1942_v51 = vld [vmem:[#allocation7 + $0x208] sm:$0xf0]  ;;  %v2128_v10 = vld [vmem:[#allocation8 + $0x70] sm:$0xf] }
  0x5b   :  { %833 = vmatpush.bf16.msra.mxu1 %v1937_v29  ;;  %799 = vmatmul.bf16.vlgmr.msrb.gmra.mxu2 %v2692_v58  ;;  %v2038_v58 = vld [vmem:[#allocation7 + $0x2c8] sm:$0xf0]  ;;  %v1897_v29 = vor.u32 %v2318_v20, %v1894_v22  ;;  %v2346_v52 = vld [vmem:[#allocation7 + $0x284] sm:$0xf]  ;;  %v2377_v12 = vld [vmem:[#allocation8 + $0x74] sm:$0xf0] }
  0x5c   :  { %847 = vmatpush.bf16.msra.mxu2 %v2001_v30  ;;  %813 = vmatmul.bf16.vlgmr.msrb.gmra.mxu3 %v2695_v5  ;;  %v1977_v5 = vor.u32 %v2338_v63, %v1974_v0  ;;  %v2041_v8 = vor.u32 %v2354_v1, %v2038_v58  ;;  %v1961_v30 = vor.u32 %v2334_v24, %v1958_v25  ;;  %v2006_v53 = vld [vmem:[#allocation7 + $0x288] sm:$0xf0]  ;;  %v2376_v13 = vld [vmem:[#allocation8 + $0x74] sm:$0xf]  ;;  %v2120_v20 = vld [vmem:[#allocation8 + $0x60] sm:$0xf] }
  0x5d   :  { %861 = vmatpush.bf16.msra.mxu3 %v2065_v34  ;;  %v2025_v34 = vor.u32 %v2350_v26, %v2022_v27  ;;  %v2374_v22 = vld [vmem:[#allocation8 + $0x64] sm:$0xf]  ;;  %v2122_v26 = vld [vmem:[#allocation8 + $0x68] sm:$0xf0]  ;;  %v2104_v49 = vld [vmem:[#allocation8 + $0x40] sm:$0xf] }
  0x5e   :  { %820 = vmatpush.bf16.msra.mxu0 %v1865_v42  ;;  %v1825_v42 = vor.u32 %v2300_v31, %v1822_v32 }
  0x5f   :  { %834 = vmatpush.bf16.msra.mxu1 %v1929_v43  ;;  %v1889_v43 = vor.u32 %v2316_v33, %v1886_v36  ;;  %v2112_v36 = vld [vmem:[#allocation8 + $0x50] sm:$0xf] }
  0x60   :  { %848 = vmatpush.bf16.msra.mxu2 %v1993_v44  ;;  %v1953_v44 = vor.u32 %v2332_v37, %v1950_v38  ;;  %v2373_v37 = vld [vmem:[#allocation8 + $0x54] sm:$0xf0]  ;;  %v2372_v38 = vld [vmem:[#allocation8 + $0x54] sm:$0xf] }
  0x61   :  { %862 = vmatpush.bf16.msra.mxu3 %v2057_v48  ;;  %v2017_v48 = vor.u32 %v2348_v40, %v2014_v41 }
  0x62   :  { %821 = vmatpush.bf16.msra.mxu0 %v1857_v54  ;;  %v1817_v54 = vor.u32 %v2298_v45, %v1814_v46 }
  0x63   :  { %835 = vmatpush.bf16.msra.mxu1 %v1921_v56  ;;  %v1945_v56 = vor.u32 %v2330_v50, %v1942_v51  ;;  %v2371_v50 = vld [vmem:[#allocation8 + $0x44] sm:$0xf0]  ;;  %v2370_v51 = vld [vmem:[#allocation8 + $0x44] sm:$0xf] }
  0x64   :  { %849 = vmatpush.bf16.msra.mxu2 %v1985_v57  ;;  %v2009_v57 = vor.u32 %v2346_v52, %v2006_v53  ;;  %v2105_v53 = vor.u32 %v2371_v50, %v2104_v49  ;;  %v2072_v49 = vld [vmem:[#allocation8] sm:$0xf]  ;;  %v2363_v50 = vld [vmem:[#allocation8 + $0x4] sm:$0xf0] }
  0x65   :  { %863 = vmatpush.bf16.msra.mxu3 %v2049_v61  ;;  %v223_v61 = vperm.slane %v2719_v59, 0 }
  0x66   :  { %822 = vmatpush.bf16.msra.mxu0 %v1849_v2 }
  0x67   :  { %836 = vmatpush.bf16.msra.mxu1 %v1913_v3 }
  0x68   :  { %850 = vmatpush.bf16.msra.mxu2 %v1977_v5 }
  0x69   :  { %864 = vmatpush.bf16.msra.mxu3 %v2041_v8 }
  0x6a   :  { %823 = vmatpush.bf16.msra.mxu0 %v1841_v15  ;;  %v2129_v15 = vor.u32 %v2377_v12, %v2128_v10  ;;  %v2088_v10 = vld [vmem:[#allocation8 + $0x20] sm:$0xf]  ;;  %v2367_v12 = vld [vmem:[#allocation8 + $0x24] sm:$0xf0] }
  0x6b   :  { %837 = vmatpush.bf16.msra.mxu1 %v1905_v16  ;;  %v2130_v16 = vld [vmem:[#allocation8 + $0x78] sm:$0xf0] }
  0x6c   :  { %851 = vmatpush.bf16.msra.mxu2 %v1969_v17  ;;  %v2133_v17 = vor.u32 %v2376_v13, %v2130_v16  ;;  %v2089_v16 = vor.u32 %v2367_v12, %v2088_v10  ;;  %v2392_v10 = vld [vmem:[#allocation8 + $0xf4] sm:$0xf]  ;;  %v2194_v12 = vld [vmem:[#allocation8 + $0xf8] sm:$0xf0] }
  0x6d   :  { %865 = vmatpush.bf16.msra.mxu3 %v2033_v21  ;;  %v2375_v21 = vld [vmem:[#allocation8 + $0x64] sm:$0xf0] }
  0x6e   :  { %824 = vmatpush.bf16.msra.mxu0 %v1833_v28  ;;  %v2121_v25 = vor.u32 %v2375_v21, %v2120_v20  ;;  %v2125_v28 = vor.u32 %v2374_v22, %v2122_v26 }
  0x6f   :  { %838 = vmatpush.bf16.msra.mxu1 %v1897_v29 }
  0x70   :  { %852 = vmatpush.bf16.msra.mxu2 %v1961_v30 }
  0x71   :  { %866 = vmatpush.bf16.msra.mxu3 %v2025_v34 }
  0x72   :  { %825 = vmatpush.bf16.msra.mxu0 %v1825_v42  ;;  %v2113_v42 = vor.u32 %v2373_v37, %v2112_v36 }
  0x73   :  { %839 = vmatpush.bf16.msra.mxu1 %v1889_v43 }
  0x74   :  { %853 = vmatpush.bf16.msra.mxu2 %v1953_v44  ;;  %v2114_v44 = vld [vmem:[#allocation8 + $0x58] sm:$0xf0] }
  0x75   :  { %867 = vmatpush.bf16.msra.mxu3 %v2017_v48  ;;  %v2117_v47 = vor.u32 %v2372_v38, %v2114_v44 }
  0x76   :  { %826 = vmatpush.bf16.msra.mxu0 %v1817_v54  ;;  %v2106_v54 = vld [vmem:[#allocation8 + $0x48] sm:$0xf0] }
  0x77   :  { %840 = vmatpush.bf16.msra.mxu1 %v1881_v55 }
  0x78   :  { %854 = vmatpush.bf16.msra.mxu2 %v1945_v56 }
  0x79   :  { %868 = vmatpush.bf16.msra.mxu3 %v2009_v57  ;;  %827 = vmatmul.bf16.vlgmr.msra.gmra.mxu0 %v2697_v11  ;;  %v2109_v57 = vor.u32 %v2370_v51, %v2106_v54  ;;  %v2362_v54 = vld [vmem:[#allocation8 + $0x4] sm:$0xf] }
  0x7a   :  { %841 = vmatmul.bf16.vlgmr.msra.gmra.mxu1 %v2701_v23  ;;  %1251 = vmatpush.bf16.msrb.mxu0 %v2129_v15 }
  0x7b   :  { %855 = vmatmul.bf16.vlgmr.msra.gmra.mxu2 %v2704_v35 }
  0x7c   :  { %869 = vmatmul.bf16.vlgmr.msra.gmra.mxu3 %v2706_v39  ;;  %1279 = vmatpush.bf16.msrb.mxu2 %v2133_v17  ;;  %v2090_v17 = vld [vmem:[#allocation8 + $0x28] sm:$0xf0] }
  0x7e   :  { %1252 = vmatpush.bf16.msrb.mxu0 %v2121_v25 }
  0x80   :  { %1280 = vmatpush.bf16.msrb.mxu2 %v2125_v28  ;;  %v2080_v28 = vld [vmem:[#allocation8 + $0x10] sm:$0xf] }
  0x82   :  { %1253 = vmatpush.bf16.msrb.mxu0 %v2113_v42 }
  0x84   :  { %1281 = vmatpush.bf16.msrb.mxu2 %v2117_v47 }
  0x86   :  { %1254 = vmatpush.bf16.msrb.mxu0 %v2105_v53  ;;  %v2073_v53 = vor.u32 %v2363_v50, %v2072_v49 }
  0x88   :  { %1282 = vmatpush.bf16.msrb.mxu2 %v2109_v57 }
  0xb6   :  { %v716_v60 = vpop.f32.mrf.mxu0 }
  0xb7   :  { %v730_v62 = vpop.f32.mrf.mxu1  ;;  %v717_v63 = vadd.f32 %v716_v60, %v223_v61 }
  0xb9   :  { %v731_v1 = vadd.f32 %v730_v62, %v717_v63 }
  0xbe   :  { %v744_v0 = vpop.f32.mrf.mxu2  ;;  %v718_v58 = vpop.f32.mrf.mxu0 }
  0xbf   :  { %v732_v11 = vpop.f32.mrf.mxu1  ;;  %v758_v2 = vpop.f32.mrf.mxu3  ;;  %v719_v23 = vadd.f32 %v718_v58, %v223_v61  ;;  %v745_v3 = vadd.f32 %v744_v0, %v731_v1  ;;  %v2096_v1 = vld [vmem:[#allocation8 + $0x30] sm:$0xf] }
  0xc1   :  { %v733_v35 = vadd.f32 %v732_v11, %v719_v23  ;;  %v759_v5 = vadd.f32 %v758_v2, %v745_v3  ;;  %v224_v11 = vperm.slane %v2719_v59, 1  ;;  %v2369_v2 = vld [vmem:[#allocation8 + $0x34] sm:$0xf0]  ;;  %v2366_v59 = vld [vmem:[#allocation8 + $0x24] sm:$0xf] }
  0xc2   :  { %v2093_v21 = vor.u32 %v2366_v59, %v2090_v17 }
  0xc6   :  { %v746_v39 = vpop.f32.mrf.mxu2 }
  0xc7   :  { %v747_v8 = vadd.f32 %v746_v39, %v733_v35  ;;  %v760_v9 = vpop.f32.mrf.mxu3  ;;  %v2097_v35 = vor.u32 %v2369_v2, %v2096_v1 }
  0xc9   :  { %v761_v19 = vadd.f32 %v760_v9, %v747_v8  ;;  %1255 = vmatpush.bf16.msrb.mxu0 %v2097_v35 }
  0xcd   :  { %1256 = vmatpush.bf16.msrb.mxu0 %v2089_v16 }
  0xd6   :  { %v772_v4 = vpop.f32.mrf.mxu0 }
  0xd7   :  { %v773_v6 = vadd.f32 %v772_v4, %v759_v5  ;;  %v786_v7 = vpop.f32.mrf.mxu1  ;;  %v2368_v5 = vld [vmem:[#allocation8 + $0x34] sm:$0xf] }
  0xd9   :  { %v2722_v14 = vadd.f32 %v786_v7, %v773_v6  ;;  %v2098_v6 = vld [vmem:[#allocation8 + $0x38] sm:$0xf0] }
  0xda   :  { %v2101_v9 = vor.u32 %v2368_v5, %v2098_v6  ;;  %v2192_v6 = vld [vmem:[#allocation8 + $0xf0] sm:$0xf] }
  0xdb   :  { %v2725_v18 = vmul.f32 0.70710677, %v2722_v14 }
  0xdc   :  { %1283 = vmatpush.bf16.msrb.mxu2 %v2101_v9 }
  0xdd   :  { %v883_v24 = vmul.f32 %v2725_v18, %v2725_v18 }
  0xde   :  { %v774_v27 = vpop.f32.mrf.mxu0  ;;  %v800_v56 = vpop.f32.mrf.mxu2 }
  0xdf   :  { %v2729_v29 = vmin.f32 %v883_v24, 16.0  ;;  %v775_v30 = vadd.f32 %v774_v27, %v761_v19  ;;  %v788_v31 = vpop.f32.mrf.mxu1  ;;  %v814_v62 = vpop.f32.mrf.mxu3  ;;  %v801_v15 = vadd.f32 %v800_v56, %v224_v11  ;;  %v2074_v56 = vld [vmem:[#allocation8 + $0x8] sm:$0xf0] }
  0xe0   :  { %1284 = vmatpush.bf16.msrb.mxu2 %v2093_v21  ;;  %v2197_v21 = vor.u32 %v2392_v10, %v2194_v12 }
  0xe1   :  { %v885_v32 = vmul.f32 2.1237322e-06, %v2729_v29  ;;  %v896_v33 = vmul.f32 3.8918573e-05, %v2729_v29  ;;  %v2733_v34 = vadd.f32 %v788_v31, %v775_v30  ;;  %v2365_v30 = vld [vmem:[#allocation8 + $0x14] sm:$0xf0] }
  0xe2   :  { %v2364_v31 = vld [vmem:[#allocation8 + $0x14] sm:$0xf]  ;;  %v2081_v38 = vor.u32 %v2365_v30, %v2080_v28  ;;  %1293 = vmatpush.bf16.msrb.mxu3 %v2197_v21  ;;  %v2390_v30 = vld [vmem:[#allocation8 + $0xe4] sm:$0xf] }
  0xe3   :  { %v886_v40 = vadd.f32 0.00028619796, %v885_v32  ;;  %v897_v41 = vadd.f32 0.001143296, %v896_v33  ;;  %v2736_v43 = vmul.f32 0.70710677, %v2733_v34  ;;  %v815_v33 = vadd.f32 %v814_v62, %v801_v15 }
  0xe4   :  { %1257 = vmatpush.bf16.msrb.mxu0 %v2081_v38 }
  0xe5   :  { %v887_v45 = vmul.f32 %v886_v40, %v2729_v29  ;;  %v898_v46 = vmul.f32 %v897_v41, %v2729_v29  ;;  %v963_v48 = vmul.f32 %v2736_v43, %v2736_v43  ;;  %v2082_v40 = vld [vmem:[#allocation8 + $0x18] sm:$0xf0] }
  0xe6   :  { %v802_v27 = vpop.f32.mrf.mxu2  ;;  %v2085_v44 = vor.u32 %v2364_v31, %v2082_v40  ;;  %v2186_v31 = vld [vmem:[#allocation8 + $0xe8] sm:$0xf0] }
  0xe7   :  { %v899_v52 = vadd.f32 0.014752088, %v898_v46  ;;  %v2742_v55 = vmin.f32 %v963_v48, 16.0  ;;  %v888_v60 = vadd.f32 0.0036580483, %v887_v45  ;;  %v816_v36 = vpop.f32.mrf.mxu3  ;;  %v2189_v38 = vor.u32 %v2390_v30, %v2186_v31 }
  0xe8   :  { %1285 = vmatpush.bf16.msrb.mxu2 %v2085_v44  ;;  %1258 = vmatpush.bf16.msrb.mxu0 %v2073_v53  ;;  %v2388_v53 = vld [vmem:[#allocation8 + $0xd4] sm:$0xf] }
  0xe9   :  { %v900_v61 = vmul.f32 %v899_v52, %v2729_v29  ;;  %v965_v63 = vmul.f32 2.1237322e-06, %v2742_v55  ;;  %v976_v0 = vmul.f32 3.8918573e-05, %v2742_v55  ;;  %v889_v39 = vmul.f32 %v888_v60, %v2729_v29  ;;  %1294 = vmatpush.bf16.msrb.mxu3 %v2189_v38  ;;  %v2383_v38 = vld [vmem:[#allocation8 + $0xa4] sm:$0xf0] }
  0xea   :  { %v803_v52 = vadd.f32 %v802_v27, %v224_v11  ;;  %v2077_v60 = vor.u32 %v2362_v54, %v2074_v56  ;;  %v2178_v54 = vld [vmem:[#allocation8 + $0xd8] sm:$0xf0] }
  0xeb   :  { %v901_v58 = vadd.f32 0.112945676, %v900_v61  ;;  %v966_v23 = vadd.f32 0.00028619796, %v965_v63  ;;  %v977_v3 = vadd.f32 0.001143296, %v976_v0 }
  0xec   :  { %v890_v22 = vadd.f32 0.05243302, %v889_v39  ;;  %v817_v2 = vadd.f32 %v816_v36, %v803_v52  ;;  %1286 = vmatpush.bf16.msrb.mxu2 %v2077_v60 }
  0xed   :  { %v902_v4 = vmul.f32 %v901_v58, %v2729_v29  ;;  %v967_v7 = vmul.f32 %v966_v23, %v2742_v55  ;;  %v978_v8 = vmul.f32 %v977_v3, %v2742_v55 }
  0xee   :  { %v891_v46 = vmul.f32 %v890_v22, %v2729_v29 }
  0xef   :  { %v903_v13 = vadd.f32 0.4994258, %v902_v4  ;;  %v968_v19 = vadd.f32 0.0036580483, %v967_v7  ;;  %v979_v20 = vadd.f32 0.014752088, %v978_v8 }
  0xf0   :  { %v892_v62 = vadd.f32 0.18741608, %v891_v46  ;;  %v2393_v7 = vld [vmem:[#allocation8 + $0xf4] sm:$0xf0] }
  0xf1   :  { %v904_v24 = vmul.f32 %v903_v13, %v2729_v29  ;;  %v969_v25 = vmul.f32 %v968_v19, %v2742_v55  ;;  %v980_v26 = vmul.f32 %v979_v20, %v2742_v55  ;;  %v2193_v20 = vor.u32 %v2393_v7, %v2192_v6 }
  0xf2   :  { %v893_v8 = vmul.f32 %v892_v62, %v2729_v29 }
  0xf3   :  { %v2755_v32 = vadd.f32 1.0, %v904_v24  ;;  %v970_v41 = vadd.f32 0.05243302, %v969_v25  ;;  %v981_v42 = vadd.f32 0.112945676, %v980_v26  ;;  %1265 = vmatpush.bf16.msrb.mxu1 %v2193_v20 }
  0xf4   :  { %v2184_v24 = vld [vmem:[#allocation8 + $0xe0] sm:$0xf]  ;;  %v2391_v25 = vld [vmem:[#allocation8 + $0xe4] sm:$0xf0]  ;;  %v894_v26 = vadd.f32 1.1283791, %v893_v8 }
  0xf5   :  { %2422 = vrcp.f32 %v2755_v32  ;;  %v982_v47 = vmul.f32 %v981_v42, %v2742_v55  ;;  %v971_v51 = vmul.f32 %v970_v41, %v2742_v55  ;;  %v915_v59 = vand.u32 2147483647, %v2755_v32 }
  0xf6   :  { %v828_v37 = vpop.f32.mrf.mxu0  ;;  %v917_v13 = vand.u32 2147483648, %v2755_v32  ;;  %vm911_vm1 = vweird.f32 %v2755_v32  ;;  %v895_v49 = vmul.f32 %v894_v26, %v2725_v18 }
  0xf7   :  { %v829_v45 = vadd.f32 %v828_v37, %v815_v33  ;;  %v842_v48 = vpop.f32.mrf.mxu1  ;;  %v983_v57 = vadd.f32 0.4994258, %v982_v47  ;;  %v972_v58 = vadd.f32 0.18741608, %v971_v51  ;;  %vm916_vm3 = vcmp.eq.f32.partialorder %v915_v59, 8.507059e+37 }
  0xf8   :  { %v918_v33 = vor.u32 1.1754944e-38, %v917_v13  ;;  %v2176_v47 = vld [vmem:[#allocation8 + $0xd0] sm:$0xf] }
  0xf9   :  { %v843_v61 = vadd.f32 %v842_v48, %v829_v45  ;;  %v984_v63 = vmul.f32 %v983_v57, %v2742_v55  ;;  %v973_v15 = vmul.f32 %v972_v58, %v2742_v55  ;;  %v2185_v55 = vor.u32 %v2391_v25, %v2184_v24  ;;  %v2389_v48 = vld [vmem:[#allocation8 + $0xd4] sm:$0xf0]  ;;  %v2168_v58 = vld [vmem:[#allocation8 + $0xc0] sm:$0xf]  ;;  %v2162_v24 = vld [vmem:[#allocation8 + $0xb8] sm:$0xf0] }
  0xfa   :  { %v2177_v52 = vor.u32 %v2389_v48, %v2176_v47 }
  0xfb   :  { %v2423_v1 = vpop.eup %2422  ;;  %v2763_v5 = vadd.f32 1.0, %v984_v63  ;;  %v974_v42 = vadd.f32 1.1283791, %v973_v15  ;;  %1266 = vmatpush.bf16.msrb.mxu1 %v2185_v55  ;;  %v2160_v15 = vld [vmem:[#allocation8 + $0xb0] sm:$0xf] }
  0xfc   :  { %v907_v11 = vmul.f32 %v2423_v1, %v2755_v32  ;;  %vm912_vm0 = vweird.f32 %v2423_v1 }
  0xfd   :  { %2424 = vrcp.f32 %v2763_v5  ;;  %vm913_vm2 = vmor %vm911_vm1, %vm912_vm0  ;;  %v995_v57 = vand.u32 2147483647, %v2763_v5  ;;  %v997_v63 = vand.u32 2147483648, %v2763_v5  ;;  %vm991_vm5 = vweird.f32 %v2763_v5 }
  0xfe   :  { %v856_v0 = vpop.f32.mrf.mxu2  ;;  %v830_v35 = vpop.f32.mrf.mxu0  ;;  %v908_v9 = vsub.f32 1.0, %v907_v11  ;;  %v975_v59 = vmul.f32 %v974_v42, %v2736_v43 }
  0xff   :  { %v857_v23 = vadd.f32 %v856_v0, %v843_v61  ;;  %v870_v3 = vpop.f32.mrf.mxu3  ;;  %v831_v4 = vadd.f32 %v830_v35, %v817_v2  ;;  %v844_v19 = vpop.f32.mrf.mxu1  ;;  %v2181_v61 = vor.u32 %v2388_v53, %v2178_v54  ;;  %v2387_v2 = vld [vmem:[#allocation8 + $0xc4] sm:$0xf0]  ;;  %1267 = vmatpush.bf16.msrb.mxu1 %v2177_v52  ;;  %vm996_vm6 = vcmp.eq.f32.partialorder %v995_v57, 8.507059e+37  ;;  %v2144_v57 = vld [vmem:[#allocation8 + $0x90] sm:$0xf] }
 0x100   :  { %v909_v17 = vmul.f32 %v2423_v1, %v908_v9  ;;  %v2169_v11 = vor.u32 %v2387_v2, %v2168_v58  ;;  %v998_v10 = vor.u32 1.1754944e-38, %v997_v63 }
 0x101   :  { %v2765_v39 = vadd.f32 %v870_v3, %v857_v23  ;;  %v845_v22 = vadd.f32 %v844_v19, %v831_v4  ;;  %v2386_v23 = vld [vmem:[#allocation8 + $0xc4] sm:$0xf]  ;;  %1295 = vmatpush.bf16.msrb.mxu3 %v2181_v61  ;;  %v2170_v4 = vld [vmem:[#allocation8 + $0xc8] sm:$0xf0]  ;;  %v2384_v19 = vld [vmem:[#allocation8 + $0xb4] sm:$0xf] }
 0x102   :  { %v910_v27 = vadd.f32 %v2423_v1, %v909_v17  ;;  %v2173_v8 = vor.u32 %v2386_v23, %v2170_v4  ;;  %v2385_v17 = vld [vmem:[#allocation8 + $0xb4] sm:$0xf0]  ;;  %v2380_v61 = vld [vmem:[#allocation8 + $0x94] sm:$0xf]  ;;  %v2379_v4 = vld [vmem:[#allocation8 + $0x84] sm:$0xf0] }
 0x103   :  { %v2773_v16 = vmul.f32 0.70710677, %v2765_v39  ;;  %v2425_v40 = vpop.eup %2424  ;;  %1268 = vmatpush.bf16.msrb.mxu1 %v2169_v11  ;;  %v2136_v11 = vld [vmem:[#allocation8 + $0x80] sm:$0xf] }
 0x104   :  { %v914_v41 = vsel %vm913_vm2, %v2423_v1, %v910_v27  ;;  %v987_v32 = vmul.f32 %v2425_v40, %v2763_v5  ;;  %vm992_vm4 = vweird.f32 %v2425_v40  ;;  %v2161_v27 = vor.u32 %v2385_v17, %v2160_v15 }
 0x105   :  { %v923_v29 = vmul.f32 %v2773_v16, %v2773_v16  ;;  %v919_v44 = vsel %vm916_vm3, %v918_v33, %v914_v41  ;;  %vm993_vm7 = vmor %vm991_vm5, %vm992_vm4  ;;  %1296 = vmatpush.bf16.msrb.mxu3 %v2173_v8 }
 0x106   :  { %v858_v28 = vpop.f32.mrf.mxu2  ;;  %v988_v56 = vsub.f32 1.0, %v987_v32  ;;  %v920_v62 = vmul.f32 %v919_v44, %v895_v49  ;;  %v2382_v32 = vld [vmem:[#allocation8 + $0xa4] sm:$0xf] }
 0x107   :  { %v2779_v36 = vmin.f32 %v923_v29, 16.0  ;;  %v859_v37 = vadd.f32 %v858_v28, %v845_v22  ;;  %v872_v46 = vpop.f32.mrf.mxu3  ;;  %v2165_v28 = vor.u32 %v2384_v19, %v2162_v24  ;;  %1269 = vmatpush.bf16.msrb.mxu1 %v2161_v27 }
 0x108   :  { %v989_v1 = vmul.f32 %v2425_v40, %v988_v56  ;;  %v2066_v9 = vclamps-f32 %v920_v62, 1.0 }
 0x109   :  { %v925_v45 = vmul.f32 2.1237322e-06, %v2779_v36  ;;  %v936_v50 = vmul.f32 3.8918573e-05, %v2779_v36  ;;  %v2785_v51 = vadd.f32 %v872_v46, %v859_v37  ;;  %v2152_v37 = vld [vmem:[#allocation8 + $0xa0] sm:$0xf]  ;;  %1297 = vmatpush.bf16.msrb.mxu3 %v2165_v28 }
 0x10a   :  { %v990_v6 = vadd.f32 %v2425_v40, %v989_v1  ;;  %v1043_v31 = vadd.f32 1.0, %v2066_v9  ;;  %v877_v46 = vmul.f32 0.5, %v2733_v34  ;;  %v2153_v48 = vor.u32 %v2383_v38, %v2152_v37  ;;  %v2146_v34 = vld [vmem:[#allocation8 + $0x98] sm:$0xf0] }
 0x10b   :  { %v926_v60 = vadd.f32 0.00028619796, %v925_v45  ;;  %v937_v0 = vadd.f32 0.001143296, %v936_v50  ;;  %v2790_v18 = vmul.f32 0.70710677, %v2785_v51  ;;  %v2149_v58 = vor.u32 %v2380_v61, %v2146_v34 }
 0x10c   :  { %v994_v13 = vsel %vm993_vm7, %v2425_v40, %v990_v6  ;;  %v875_v40 = vmul.f32 0.5, %v2722_v14  ;;  %v2154_v45 = vld [vmem:[#allocation8 + $0xa8] sm:$0xf0]  ;;  %1270 = vmatpush.bf16.msrb.mxu1 %v2153_v48  ;;  %v2378_v6 = vld [vmem:[#allocation8 + $0x84] sm:$0xf]  ;;  %v2137_v9 = vor.u32 %v2379_v4, %v2136_v11 }
 0x10d   :  { %v938_v3 = vmul.f32 %v937_v0, %v2779_v36  ;;  %v1003_v35 = vmul.f32 %v2790_v18, %v2790_v18  ;;  %v927_v7 = vmul.f32 %v926_v60, %v2779_v36  ;;  %v999_v20 = vsel %vm996_vm6, %v998_v10, %v994_v13  ;;  %v2381_v60 = vld [vmem:[#allocation8 + $0x94] sm:$0xf0] }
 0x10e   :  { %v1000_v25 = vmul.f32 %v999_v20, %v975_v59  ;;  %v2157_v49 = vor.u32 %v2382_v32, %v2154_v45  ;;  %v1047_v54 = vmul.f32 %v1043_v31, %v875_v40  ;;  %v2145_v1 = vor.u32 %v2381_v60, %v2144_v57 }
 0x10f   :  { %v939_v12 = vadd.f32 0.014752088, %v938_v3  ;;  %v2798_v5 = vmin.f32 %v1003_v35, 16.0  ;;  %v928_v26 = vadd.f32 0.0036580483, %v927_v7 }
 0x110   :  { %v2068_v33 = vclamps-f32 %v1000_v25, 1.0  ;;  %1298 = vmatpush.bf16.msrb.mxu3 %v2157_v49  ;;  %1271 = vmatpush.bf16.msrb.mxu1 %v2145_v1  ;;  %v2138_v7 = vld [vmem:[#allocation8 + $0x88] sm:$0xf0] }
 0x111   :  { %v940_v21 = vmul.f32 %v939_v12, %v2779_v36  ;;  %v1005_v29 = vmul.f32 2.1237322e-06, %v2798_v5  ;;  %v1016_v22 = vmul.f32 3.8918573e-05, %v2798_v5  ;;  %v929_v50 = vmul.f32 %v928_v26, %v2779_v36 }
 0x112   :  { %v1045_v47 = vadd.f32 1.0, %v2068_v33  ;;  %v2141_v10 = vor.u32 %v2378_v6, %v2138_v7 }
 0x113   :  { %v941_v55 = vadd.f32 0.112945676, %v940_v21  ;;  %v1006_v43 = vadd.f32 0.00028619796, %v1005_v29  ;;  %v1017_v30 = vadd.f32 0.001143296, %v1016_v22 }
 0x114   :  { %v1049_v56 = vmul.f32 %v1045_v47, %v877_v46  ;;  %v930_v2 = vadd.f32 0.05243302, %v929_v50  ;;  %1299 = vmatpush.bf16.msrb.mxu3 %v2149_v58  ;;  %1272 = vmatpush.bf16.msrb.mxu1 %v2137_v9 }
 0x115   :  { %v942_v41 = vmul.f32 %v941_v55, %v2779_v36  ;;  %v1007_v42 = vmul.f32 %v1006_v43, %v2798_v5  ;;  %v1018_v44 = vmul.f32 %v1017_v30, %v2798_v5 }
 0x116   :  { %v1051_v0 = vpack.c.bf16 %v1049_v56, %v1047_v54  ;;  %v931_v12 = vmul.f32 %v930_v2, %v2779_v36  ;;  %v876_v54 = vmul.f32 0.5, %v2765_v39  ;;  %v878_v56 = vmul.f32 0.5, %v2785_v51 }
 0x117   :  { %v943_v52 = vadd.f32 0.4994258, %v942_v41  ;;  %v1008_v53 = vadd.f32 0.0036580483, %v1007_v42  ;;  %v1019_v14 = vadd.f32 0.014752088, %v1018_v44 }
 0x118   :  { %1259 = vmatmul.bf16.vlgmr.msrb.gmra.mxu0 %v1051_v0  ;;  %1287 = vmatmul.bf16.vlgmr.msrb.gmra.mxu2 %v1051_v0  ;;  %v932_v19 = vadd.f32 0.18741608, %v931_v12 }
 0x119   :  { %v944_v62 = vmul.f32 %v943_v52, %v2779_v36  ;;  %v1020_v63 = vmul.f32 %v1019_v14, %v2798_v5  ;;  %v1009_v35 = vmul.f32 %v1008_v53, %v2798_v5  ;;  %1300 = vmatpush.bf16.msrb.mxu3 %v2141_v10 }
 0x11a   :  { %v933_v24 = vmul.f32 %v932_v19, %v2779_v36  ;;  %v2400_v19 = vld [vmem:[#allocation10 + $0x30] sm:$0xff] }
 0x11b   :  { %v945_v23 = vadd.f32 1.0, %v944_v62  ;;  %v1021_v3 = vadd.f32 0.112945676, %v1020_v63  ;;  %v1010_v59 = vadd.f32 0.05243302, %v1009_v35 }
 0x11c   :  { %v934_v43 = vadd.f32 1.1283791, %v933_v24 }
 0x11d   :  { %2426 = vrcp.f32 %v945_v23  ;;  %v1022_v8 = vmul.f32 %v1021_v3, %v2798_v5  ;;  %v1011_v21 = vmul.f32 %v1010_v59, %v2798_v5  ;;  %v957_v26 = vand.u32 2147483648, %v945_v23 }
 0x11e   :  { %v955_v28 = vand.u32 2147483647, %v945_v23  ;;  %vm951_vm9 = vweird.f32 %v945_v23  ;;  %v935_v41 = vmul.f32 %v934_v43, %v2773_v16 }
 0x11f   :  { %v1023_v13 = vadd.f32 0.4994258, %v1022_v8  ;;  %v1012_v27 = vadd.f32 0.18741608, %v1011_v21  ;;  %v958_v33 = vor.u32 1.1754944e-38, %v957_v26  ;;  %v2401_v8 = vld [vmem:[#allocation10 + $0x38] sm:$0xff] }
 0x120   :  { %vm956_vm11 = vcmp.eq.f32.partialorder %v955_v28, 8.507059e+37  ;;  %1617 = vmatpush.bf16.msra.mxu0 %v2401_v8 }
 0x121   :  { %v1024_v15 = vmul.f32 %v1023_v13, %v2798_v5  ;;  %v1013_v37 = vmul.f32 %v1012_v27, %v2798_v5 }
 0x123   :  { %v2427_v17 = vpop.eup %2426  ;;  %v1025_v29 = vadd.f32 1.0, %v1024_v15  ;;  %v1014_v42 = vadd.f32 1.1283791, %v1013_v37 }
 0x124   :  { %v947_v20 = vmul.f32 %v2427_v17, %v945_v23  ;;  %vm952_vm8 = vweird.f32 %v2427_v17  ;;  %1618 = vmatpush.bf16.msra.mxu0 %v2400_v19 }
 0x125   :  { %2428 = vrcp.f32 %v1025_v29  ;;  %vm953_vm10 = vmor %vm951_vm9, %vm952_vm8  ;;  %v1037_v44 = vand.u32 2147483648, %v1025_v29  ;;  %v1035_v46 = vand.u32 2147483647, %v1025_v29  ;;  %vm1031_vm13 = vweird.f32 %v1025_v29 }
 0x126   :  { %v948_v22 = vsub.f32 1.0, %v947_v20  ;;  %v1015_v50 = vmul.f32 %v1014_v42, %v2790_v18  ;;  %v1085_v18 = vld [vmem:[%s2953_s5] sm:$0x3] }
 0x127   :  { %v1038_v48 = vor.u32 1.1754944e-38, %v1037_v44  ;;  %vm1036_vm15 = vcmp.eq.f32.partialorder %v1035_v46, 8.507059e+37  ;;  %v1087_v34 = vperm.slane %v1085_v18, 0  ;;  %v1088_v2 = vperm.slane %v1085_v18, 1  ;;  %v2397_v18 = vld [vmem:[#allocation10 + $0x18] sm:$0xff] }
 0x128   :  { %v949_v25 = vmul.f32 %v2427_v17, %v948_v22 }
 0x12a   :  { %v950_v55 = vadd.f32 %v2427_v17, %v949_v25  ;;  %v2409_v25 = vld [vmem:[#allocation10 + $0x78] sm:$0xff] }
 0x12b   :  { %v2429_v30 = vpop.eup %2428  ;;  %1631 = vmatpush.bf16.msra.mxu1 %v2409_v25 }
 0x12c   :  { %v954_v31 = vsel %vm953_vm10, %v2427_v17, %v950_v55  ;;  %v1027_v38 = vmul.f32 %v2429_v30, %v1025_v29  ;;  %vm1032_vm12 = vweird.f32 %v2429_v30 }
 0x12d   :  { %v959_v40 = vsel %vm956_vm11, %v958_v33, %v954_v31  ;;  %vm1033_vm14 = vmor %vm1031_vm13, %vm1032_vm12 }
 0x12e   :  { %v1028_v36 = vsub.f32 1.0, %v1027_v38  ;;  %v960_v32 = vmul.f32 %v959_v40, %v935_v41  ;;  %v2408_v41 = vld [vmem:[#allocation10 + $0x70] sm:$0xff] }
 0x12f   :  { %1632 = vmatpush.bf16.msra.mxu1 %v2408_v41 }
 0x130   :  { %v1029_v45 = vmul.f32 %v2429_v30, %v1028_v36  ;;  %v2067_v49 = vclamps-f32 %v960_v32, 1.0 }
 0x132   :  { %v1030_v47 = vadd.f32 %v2429_v30, %v1029_v45  ;;  %v1044_v14 = vadd.f32 1.0, %v2067_v49  ;;  %v2398_v49 = vld [vmem:[#allocation10 + $0x20] sm:$0xff] }
 0x134   :  { %v1034_v5 = vsel %vm1033_vm14, %v2429_v30, %v1030_v47  ;;  %v1048_v60 = vmul.f32 %v1044_v14, %v876_v54  ;;  %v2399_v30 = vld [vmem:[#allocation10 + $0x28] sm:$0xff] }
 0x135   :  { %v1039_v52 = vsel %vm1036_vm15, %v1038_v48, %v1034_v5  ;;  %1619 = vmatpush.bf16.msra.mxu0 %v2399_v30  ;;  %v2407_v14 = vld [vmem:[#allocation10 + $0x68] sm:$0xff] }
 0x136   :  { %v1040_v53 = vmul.f32 %v1039_v52, %v1015_v50  ;;  %1633 = vmatpush.bf16.msra.mxu1 %v2407_v14 }
 0x138   :  { %v2069_v16 = vclamps-f32 %v1040_v53, 1.0 }
 0x139   :  { %1620 = vmatpush.bf16.msra.mxu0 %v2398_v49 }
 0x13a   :  { %v1046_v57 = vadd.f32 1.0, %v2069_v16 }
 0x13c   :  { %v1050_v61 = vmul.f32 %v1046_v57, %v878_v56 }
 0x13d   :  { %1621 = vmatpush.bf16.msra.mxu0 %v2397_v18 }
 0x13e   :  { %v1052_v62 = vpack.c.bf16 %v1050_v61, %v1048_v60 }
 0x140   :  { %1273 = vmatmul.bf16.vlgmr.msrb.gmra.mxu1 %v1052_v62  ;;  %1301 = vmatmul.bf16.vlgmr.msrb.gmra.mxu3 %v1052_v62 }
 0x195   :  { %v1260_v63 = vpop.f32.mrf.mxu0 }
 0x196   :  { %v1261_v0 = vadd.f32 %v1260_v63, %v1087_v34 }
 0x19b   :  { %v1288_v1 = vpop.f32.mrf.mxu2 }
 0x19c   :  { %v1289_v3 = vadd.f32 %v1288_v1, %v1088_v2 }
 0x19d   :  { %v1262_v51 = vpop.f32.mrf.mxu0 }
 0x19e   :  { %v1263_v4 = vadd.f32 %v1262_v51, %v1087_v34 }
 0x1a3   :  { %v1290_v13 = vpop.f32.mrf.mxu2 }
 0x1a4   :  { %v1291_v22 = vadd.f32 %v1290_v13, %v1088_v2 }
 0x1bd   :  { %v1274_v58 = vpop.f32.mrf.mxu1 }
 0x1be   :  { %v2826_v23 = vadd.f32 %v1274_v58, %v1261_v0  ;;  %v2406_v58 = vld [vmem:[#allocation10 + $0x60] sm:$0xff] }
 0x1bf   :  { %1634 = vmatpush.bf16.msra.mxu1 %v2406_v58 }
 0x1c0   :  { %v2829_v39 = vmul.f32 0.70710677, %v2826_v23 }
 0x1c2   :  { %v1315_v35 = vmul.f32 %v2829_v39, %v2829_v39 }
 0x1c3   :  { %v1302_v11 = vpop.f32.mrf.mxu3 }
 0x1c4   :  { %v2833_v6 = vmin.f32 %v1315_v35, 16.0  ;;  %v2835_v7 = vadd.f32 %v1302_v11, %v1289_v3 }
 0x1c5   :  { %v1276_v9 = vpop.f32.mrf.mxu1 }
 0x1c6   :  { %v1317_v10 = vmul.f32 2.1237322e-06, %v2833_v6  ;;  %v1328_v12 = vmul.f32 3.8918573e-05, %v2833_v6  ;;  %v2839_v59 = vadd.f32 %v1276_v9, %v1263_v4  ;;  %v2842_v15 = vmul.f32 0.70710677, %v2835_v7 }
 0x1c7   :  { %v2396_v4 = vld [vmem:[#allocation10 + $0x10] sm:$0xff] }
 0x1c8   :  { %v1329_v17 = vadd.f32 0.001143296, %v1328_v12  ;;  %v1318_v20 = vadd.f32 0.00028619796, %v1317_v10  ;;  %v1355_v21 = vmul.f32 %v2842_v15, %v2842_v15  ;;  %v2847_v29 = vmul.f32 0.70710677, %v2839_v59  ;;  %1622 = vmatpush.bf16.msra.mxu0 %v2396_v4 }
 0x1ca   :  { %v1330_v24 = vmul.f32 %v1329_v17, %v2833_v6  ;;  %v2850_v26 = vmin.f32 %v1355_v21, 16.0  ;;  %v1395_v27 = vmul.f32 %v2847_v29, %v2847_v29  ;;  %v1319_v31 = vmul.f32 %v1318_v20, %v2833_v6  ;;  %v2405_v17 = vld [vmem:[#allocation10 + $0x58] sm:$0xff] }
 0x1cb   :  { %v1304_v28 = vpop.f32.mrf.mxu3  ;;  %1635 = vmatpush.bf16.msra.mxu1 %v2405_v17 }
 0x1cc   :  { %v1331_v55 = vadd.f32 0.014752088, %v1330_v24  ;;  %v2854_v43 = vadd.f32 %v1304_v28, %v1291_v22  ;;  %v1368_v33 = vmul.f32 3.8918573e-05, %v2850_v26  ;;  %v2858_v37 = vmin.f32 %v1395_v27, 16.0  ;;  %v2395_v22 = vld [vmem:[#allocation10 + $0x8] sm:$0xff] }
 0x1cd   :  { %v1357_v36 = vmul.f32 2.1237322e-06, %v2850_v26  ;;  %v1320_v47 = vadd.f32 0.0036580483, %v1319_v31  ;;  %v2404_v31 = vld [vmem:[#allocation10 + $0x50] sm:$0xff]  ;;  %1623 = vmatpush.bf16.msra.mxu0 %v2395_v22 }
 0x1ce   :  { %v1332_v38 = vmul.f32 %v1331_v55, %v2833_v6  ;;  %v2862_v40 = vmul.f32 0.70710677, %v2854_v43  ;;  %v1369_v42 = vadd.f32 0.001143296, %v1368_v33  ;;  %v1397_v44 = vmul.f32 2.1237322e-06, %v2858_v37 }
 0x1cf   :  { %v1408_v45 = vmul.f32 3.8918573e-05, %v2858_v37  ;;  %v1358_v16 = vadd.f32 0.00028619796, %v1357_v36  ;;  %v1321_v63 = vmul.f32 %v1320_v47, %v2833_v6  ;;  %1636 = vmatpush.bf16.msra.mxu1 %v2404_v31 }
 0x1d0   :  { %v1333_v32 = vadd.f32 0.112945676, %v1332_v38  ;;  %v1435_v46 = vmul.f32 %v2862_v40, %v2862_v40  ;;  %v1370_v48 = vmul.f32 %v1369_v42, %v2850_v26  ;;  %v1398_v5 = vadd.f32 0.00028619796, %v1397_v44  ;;  %v2394_v44 = vld [vmem:[#allocation10] sm:$0xff] }
 0x1d1   :  { %v1409_v52 = vadd.f32 0.001143296, %v1408_v45  ;;  %v1359_v2 = vmul.f32 %v1358_v16, %v2850_v26  ;;  %v1322_v10 = vadd.f32 0.05243302, %v1321_v63  ;;  %1624 = vmatpush.bf16.msra.mxu0 %v2394_v44 }
 0x1d2   :  { %v1334_v50 = vmul.f32 %v1333_v32, %v2833_v6  ;;  %v2871_v53 = vmin.f32 %v1435_v46, 16.0  ;;  %v1371_v54 = vadd.f32 0.014752088, %v1370_v48  ;;  %v1399_v0 = vmul.f32 %v1398_v5, %v2858_v37  ;;  %v2403_v48 = vld [vmem:[#allocation10 + $0x48] sm:$0xff] }
 0x1d3   :  { %v1410_v57 = vmul.f32 %v1409_v52, %v2858_v37  ;;  %v1360_v19 = vadd.f32 0.0036580483, %v1359_v2  ;;  %v1323_v27 = vmul.f32 %v1322_v10, %v2833_v6  ;;  %1637 = vmatpush.bf16.msra.mxu1 %v2403_v48 }
 0x1d4   :  { %v1335_v56 = vadd.f32 0.4994258, %v1334_v50  ;;  %v1372_v60 = vmul.f32 %v1371_v54, %v2850_v26  ;;  %v1437_v61 = vmul.f32 2.1237322e-06, %v2871_v53  ;;  %v1448_v62 = vmul.f32 3.8918573e-05, %v2871_v53 }
 0x1d5   :  { %v1411_v1 = vadd.f32 0.014752088, %v1410_v57  ;;  %v1400_v12 = vadd.f32 0.0036580483, %v1399_v0  ;;  %v1361_v33 = vmul.f32 %v1360_v19, %v2850_v26  ;;  %v1324_v46 = vadd.f32 0.18741608, %v1323_v27 }
 0x1d6   :  { %v1336_v34 = vmul.f32 %v1335_v56, %v2833_v6  ;;  %v1373_v51 = vadd.f32 0.112945676, %v1372_v60  ;;  %v1449_v3 = vadd.f32 0.001143296, %v1448_v62  ;;  %v1438_v9 = vadd.f32 0.00028619796, %v1437_v61 }
 0x1d7   :  { %v1412_v11 = vmul.f32 %v1411_v1, %v2858_v37  ;;  %v1401_v28 = vmul.f32 %v1400_v12, %v2858_v37  ;;  %v1362_v50 = vadd.f32 0.05243302, %v1361_v33  ;;  %v1325_v57 = vmul.f32 %v1324_v46, %v2833_v6  ;;  %v2402_v61 = vld [vmem:[#allocation10 + $0x40] sm:$0xff] }
 0x1d8   :  { %v2881_v35 = vadd.f32 1.0, %v1336_v34  ;;  %v1374_v8 = vmul.f32 %v1373_v51, %v2850_v26  ;;  %v1450_v13 = vmul.f32 %v1449_v3, %v2871_v53  ;;  %v1439_v25 = vmul.f32 %v1438_v9, %v2871_v53  ;;  %1638 = vmatpush.bf16.msra.mxu1 %v2402_v61 }
 0x1d9   :  { %v1413_v21 = vadd.f32 0.112945676, %v1412_v11  ;;  %v1402_v47 = vadd.f32 0.05243302, %v1401_v28  ;;  %v1363_v63 = vmul.f32 %v1362_v50, %v2850_v26  ;;  %v1326_v3 = vadd.f32 1.1283791, %v1325_v57 }
 0x1da   :  { %2430 = vrcp.f32 %v2881_v35  ;;  %v1375_v20 = vadd.f32 0.4994258, %v1374_v8  ;;  %v1451_v30 = vadd.f32 0.014752088, %v1450_v13  ;;  %v1440_v45 = vadd.f32 0.0036580483, %v1439_v25 }
 0x1db   :  { %v1414_v55 = vmul.f32 %v1413_v21, %v2858_v37  ;;  %v1403_v60 = vmul.f32 %v1402_v47, %v2858_v37  ;;  %v1349_v34 = vand.u32 2147483648, %v2881_v35  ;;  %vm1343_vm1 = vweird.f32 %v2881_v35 }
 0x1dc   :  { %v1376_v24 = vmul.f32 %v1375_v20, %v2850_v26  ;;  %v1452_v42 = vmul.f32 %v1451_v30, %v2871_v53  ;;  %v1441_v54 = vmul.f32 %v1440_v45, %v2871_v53  ;;  %v1347_v1 = vand.u32 2147483647, %v2881_v35 }
 0x1dd   :  { %v1415_v36 = vadd.f32 0.4994258, %v1414_v55  ;;  %v1404_v51 = vadd.f32 0.18741608, %v1403_v60  ;;  %v1364_v4 = vadd.f32 0.18741608, %v1363_v63  ;;  %v1327_v21 = vmul.f32 %v1326_v3, %v2829_v39 }
 0x1de   :  { %v2893_v38 = vadd.f32 1.0, %v1376_v24  ;;  %v1453_v52 = vadd.f32 0.112945676, %v1452_v42  ;;  %v1442_v6 = vadd.f32 0.05243302, %v1441_v54  ;;  %v1350_v9 = vor.u32 1.1754944e-38, %v1349_v34 }
 0x1df   :  { %v1416_v5 = vmul.f32 %v1415_v36, %v2858_v37  ;;  %vm1348_vm3 = vcmp.eq.f32.partialorder %v1347_v1, 8.507059e+37  ;;  %v1365_v22 = vmul.f32 %v1364_v4, %v2850_v26 }
 0x1e0   :  { %v2431_v41 = vpop.eup %2430  ;;  %2432 = vrcp.f32 %v2893_v38  ;;  %v1454_v56 = vmul.f32 %v1453_v52, %v2871_v53  ;;  %v1443_v13 = vmul.f32 %v1442_v6, %v2871_v53  ;;  %vm1383_vm4 = vweird.f32 %v2893_v38 }
 0x1e1   :  { %v1339_v32 = vmul.f32 %v2431_v41, %v2881_v35  ;;  %v2899_v16 = vadd.f32 1.0, %v1416_v5  ;;  %vm1344_vm0 = vweird.f32 %v2431_v41  ;;  %v1405_v35 = vmul.f32 %v1404_v51, %v2858_v37 }
 0x1e2   :  { %v1455_v58 = vadd.f32 0.4994258, %v1454_v56  ;;  %vm1345_vm2 = vmor %vm1343_vm1, %vm1344_vm0  ;;  %v1387_v25 = vand.u32 2147483647, %v2893_v38  ;;  %v1389_v55 = vand.u32 2147483648, %v2893_v38 }
 0x1e3   :  { %v1340_v49 = vsub.f32 1.0, %v1339_v32  ;;  %2434 = vrcp.f32 %v2899_v16  ;;  %v1429_v30 = vand.u32 2147483648, %v2899_v16  ;;  %v1444_v37 = vadd.f32 0.18741608, %v1443_v13 }
 0x1e4   :  { %v1456_v8 = vmul.f32 %v1455_v58, %v2871_v53  ;;  %v1406_v31 = vadd.f32 1.1283791, %v1405_v35  ;;  %v1427_v39 = vand.u32 2147483647, %v2899_v16  ;;  %v1366_v26 = vadd.f32 1.1283791, %v1365_v22 }
 0x1e5   :  { %v1341_v14 = vmul.f32 %v2431_v41, %v1340_v49  ;;  %vm1388_vm8 = vcmp.eq.f32.partialorder %v1387_v25, 8.507059e+37  ;;  %vm1423_vm9 = vweird.f32 %v2899_v16  ;;  %v1390_v45 = vor.u32 1.1754944e-38, %v1389_v55 }
 0x1e6   :  { %v2433_v62 = vpop.eup %2432  ;;  %v1457_v17 = vadd.f32 1.0, %v1456_v8  ;;  %v1430_v46 = vor.u32 1.1754944e-38, %v1429_v30  ;;  %v1445_v47 = vmul.f32 %v1444_v37, %v2871_v53  ;;  %vm1428_vm11 = vcmp.eq.f32.partialorder %v1427_v39, 8.507059e+37 }
 0x1e7   :  { %v1342_v18 = vadd.f32 %v2431_v41, %v1341_v14  ;;  %v1379_v0 = vmul.f32 %v2433_v62, %v2893_v38  ;;  %vm1384_vm5 = vweird.f32 %v2433_v62  ;;  %v1407_v38 = vmul.f32 %v1406_v31, %v2847_v29 }
 0x1e8   :  { %2436 = vrcp.f32 %v1457_v17  ;;  %vm2924_vm7 = vmor %vm1383_vm4, %vm1384_vm5  ;;  %v1367_v52 = vmul.f32 %v1366_v26, %v2842_v15  ;;  %v1467_v57 = vand.u32 2147483647, %v1457_v17  ;;  %v1469_v60 = vand.u32 2147483648, %v1457_v17 }
 0x1e9   :  { %v1380_v2 = vsub.f32 1.0, %v1379_v0  ;;  %v1346_v11 = vsel %vm1345_vm2, %v2431_v41, %v1342_v18  ;;  %v2435_v12 = vpop.eup %2434  ;;  %v1307_v53 = vmul.f32 0.5, %v2826_v23  ;;  %v1309_v29 = vmul.f32 0.5, %v2839_v59 }
 0x1ea   :  { %v1351_v19 = vsel %vm1348_vm3, %v1350_v9, %v1346_v11  ;;  %v1419_v20 = vmul.f32 %v2435_v12, %v2899_v16  ;;  %vm1424_vm6 = vweird.f32 %v2435_v12  ;;  %v1446_v16 = vadd.f32 1.1283791, %v1445_v47 }
 0x1eb   :  { %v1381_v10 = vmul.f32 %v2433_v62, %v1380_v2  ;;  %v1352_v28 = vmul.f32 %v1351_v19, %v1327_v21  ;;  %vm1425_vm10 = vmor %vm1423_vm9, %vm1424_vm6  ;;  %vm1463_vm13 = vweird.f32 %v1457_v17  ;;  %v1470_v1 = vor.u32 1.1754944e-38, %v1469_v60 }
 0x1ec   :  { %v1420_v27 = vsub.f32 1.0, %v1419_v20  ;;  %v1447_v15 = vmul.f32 %v1446_v16, %v2862_v40  ;;  %vm1468_vm15 = vcmp.eq.f32.partialorder %v1467_v57, 8.507059e+37  ;;  %v1308_v23 = vmul.f32 0.5, %v2835_v7 }
 0x1ed   :  { %v1382_v24 = vadd.f32 %v2433_v62, %v1381_v10  ;;  %v2198_v32 = vclamps-f32 %v1352_v28, 1.0  ;;  %v1310_v59 = vmul.f32 0.5, %v2854_v43 }
 0x1ee   :  { %v1421_v33 = vmul.f32 %v2435_v12, %v1420_v27  ;;  %v2437_v44 = vpop.eup %2436 }
 0x1ef   :  { %v1386_v36 = vsel %vm2924_vm7, %v2433_v62, %v1382_v24  ;;  %v1459_v49 = vmul.f32 %v2437_v44, %v1457_v17  ;;  %v1475_v56 = vadd.f32 1.0, %v2198_v32  ;;  %vm1464_vm12 = vweird.f32 %v2437_v44  ;;  %v2421_v17 = vld [vmem:[%s2955_s7] ss:$0 sm:$0xff]  ;;  %s1665_s7 = sshll.u32 %s2957_s9, 4  ;;  %s1666_s7 = int_to_ptr.hbm [resolvable:$true] %s1665_s7 }
 0x1f0   :  { %v1422_v42 = vadd.f32 %v2435_v12, %v1421_v33  ;;  %v1391_v50 = vsel %vm1388_vm8, %v1390_v45, %v1386_v36  ;;  %vm1465_vm14 = vmor %vm1463_vm13, %vm1464_vm12 }
 0x1f1   :  { %v1460_v54 = vsub.f32 1.0, %v1459_v49  ;;  %v1392_v61 = vmul.f32 %v1391_v50, %v1367_v52  ;;  %v1479_v0 = vmul.f32 %v1475_v56, %v1307_v53 }
 0x1f2   :  { %v1426_v48 = vsel %vm1425_vm10, %v2435_v12, %v1422_v42 }
 0x1f3   :  { %v1431_v5 = vsel %vm1428_vm11, %v1430_v46, %v1426_v48  ;;  %v1461_v18 = vmul.f32 %v2437_v44, %v1460_v54  ;;  %v2199_v6 = vclamps-f32 %v1392_v61, 1.0 }
 0x1f4   :  { %v1432_v14 = vmul.f32 %v1431_v5, %v1407_v38 }
 0x1f5   :  { %v1462_v34 = vadd.f32 %v2437_v44, %v1461_v18  ;;  %v1476_v4 = vadd.f32 1.0, %v2199_v6 }
 0x1f6   :  { %v2200_v62 = vclamps-f32 %v1432_v14, 1.0 }
 0x1f7   :  { %v1466_v2 = vsel %vm1465_vm14, %v2437_v44, %v1462_v34  ;;  %v1480_v10 = vmul.f32 %v1476_v4, %v1308_v23 }
 0x1f8   :  { %v1477_v63 = vadd.f32 1.0, %v2200_v62  ;;  %v1471_v51 = vsel %vm1468_vm15, %v1470_v1, %v1466_v2 }
 0x1f9   :  { %v1472_v11 = vmul.f32 %v1471_v51, %v1447_v15 }
 0x1fa   :  { %v1481_v58 = vmul.f32 %v1477_v63, %v1309_v29 }
 0x1fb   :  { %v2201_v8 = vclamps-f32 %v1472_v11, 1.0 }
 0x1fc   :  { %v1483_v3 = vpack.c.bf16 %v1481_v58, %v1479_v0 }
 0x1fd   :  { %v1478_v9 = vadd.f32 1.0, %v2201_v8 }
 0x1fe   :  { %1625 = vmatmul.bf16.vlgmr.msra.gmra.mxu0 %v1483_v3 }
 0x1ff   :  { %v1482_v12 = vmul.f32 %v1478_v9, %v1310_v59 }
 0x201   :  { %v1484_v40 = vpack.c.bf16 %v1482_v12, %v1480_v10 }
 0x203   :  { %1639 = vmatmul.bf16.vlgmr.msra.gmra.mxu1 %v1484_v40 }
 0x27b   :  { %v1626_v13 = vpop.f32.mrf.mxu0 }
 0x27c   :  { %v1627_v19 = vadd.f32 %v2421_v17, %v1626_v13 }
 0x280   :  { %v1640_v7 = vpop.f32.mrf.mxu1 }
 0x281   :  { %v1641_v35 = vadd.f32 %v1640_v7, %v1627_v19 }
 0x283   :  { %1645 = vst [vmem:[#allocation11] sm:$0xff] %v1641_v35  ;;  %v1628_v43 = vpop.f32.mrf.mxu0 }
 0x284   :  { %1657 = dma.vmem_to_hbm [thread:$0]  %s1653_s17, 128, %s1655_s20, [#allocation4]   ;;  %v1629_v20 = vadd.f32 %v2421_v17, %v1628_v43 }
 0x288   :  { %v1642_v21 = vpop.f32.mrf.mxu1 }
 0x289   :  { %v1643_v22 = vadd.f32 %v1642_v21, %v1629_v20 }
 0x28b   :  { %1646 = vst [vmem:[#allocation12] sm:$0xff] %v1643_v22 }
 0x28c   :  { %1668 = dma.vmem_to_hbm [thread:$0]  %s1664_s1, 128, %s1666_s7, [#allocation13]  }
 0x28d   :  { %2612 = dma.done.wait [#allocation4], 128  }
 0x28e   :  { %2613 = vsyncadd [#allocation4], 4294967168 }
 0x28f   :  { %2614 = dma.done.wait [#allocation13], 128  }
 0x290   :  { %2615 = vsyncadd [#allocation13], 4294967168 }
 0x291   :  { %1677 = vsyncpa [#allocation3], 1 }
 0x292   :  { %1678 = vsyncpa [#allocation6], 1 }
 0x293   :  { %1679 = vsyncpa [#allocation9], 1 }
 0x294   :  { %1680 = vsyncpa [#allocation4], 1 }
 0x295   :  { %1681 = vsyncpa [#allocation13], 1 }

</bundles_post_ra>
